<compile_context>
chip_gen: v7x
topology: tpu7x:2x2x1
jax: 0.10.0
libtpu: 0.0.40
codegen_flags: <defaults>
</compile_context>

<pallas_src>
import math
from functools import partial

import jax
import jax.numpy as jnp
from jax import lax
from jax.experimental import pallas as pl
from jax.experimental.pallas import tpu as pltpu


# --------------------------- fused EncoderLayer kernel -----------------------
def encoder_layer_kernel(x_ref, causal_ref,
                         wq_ref, bq_ref, wk_ref, bk_ref, wv_ref, bv_ref,
                         ln1_g_ref, ln1_b_ref,
                         w1_ref, b1_ref, w2_ref, b2_ref,
                         ln2_g_ref, ln2_b_ref,
                         out_ref, attn_ref,
                         *, block_b, n_head, d_k, d_v, eps_attn, eps_ffn,
                         compute_dtype):
    bb = block_b
    H = n_head
    L = x_ref.shape[1]
    D = x_ref.shape[2]
    R = bb * L                  # rows fed to the MXU M dimension
    G = bb * H                  # merged (batch, head) einsum batch

    x = x_ref[...]              # (bb, L, D) f32
    xf = x.reshape(R, D)        # free reshape (leading dims merged)
    xc = xf.astype(compute_dtype)

    # --- QKV projections: (R, D) x (D, H*d) MXU matmuls, f32 accumulation.
    # q-scale is already folded into wq/bq host-side.
    q = jnp.dot(xc, wq_ref[...], preferred_element_type=jnp.float32) + bq_ref[...]
    k = jnp.dot(xc, wk_ref[...], preferred_element_type=jnp.float32) + bk_ref[...]
    v = jnp.dot(xc, wv_ref[...], preferred_element_type=jnp.float32) + bv_ref[...]

    # --- head-major batching: (G, L, d) for one batched attention einsum.
    q_g = q.reshape(bb, L, H, d_k).transpose(0, 2, 1, 3).reshape(G, L, d_k)
    k_g = k.reshape(bb, L, H, d_k).transpose(0, 2, 1, 3).reshape(G, L, d_k)
    v_g = v.reshape(bb, L, H, d_v).transpose(0, 2, 1, 3).reshape(G, L, d_v)

    s = jnp.einsum('glc,gmc->glm',
                   q_g.astype(compute_dtype), k_g.astype(compute_dtype),
                   preferred_element_type=jnp.float32)        # (G, L, L) f32
    s = s + causal_ref[...][None, :, :]                       # additive causal mask

    # --- numerically-stable softmax over keys (exact division, f32).
    s = s - jnp.max(s, axis=-1, keepdims=True)
    e = jnp.exp(s)
    p = e / jnp.sum(e, axis=-1, keepdims=True)

    # attention map stored un-flattened (leading-dim split only -> no relayout).
    attn_ref[...] = p.reshape(bb, H, L, L).astype(attn_ref.dtype)

    # --- attention output, all (batch, head) pairs in one batched matmul.
    ctx = jnp.einsum('glm,gmc->glc',
                     p.astype(compute_dtype), v_g.astype(compute_dtype),
                     preferred_element_type=jnp.float32)      # (G, L, d_v)
    y = ctx.reshape(bb, H, L, d_v).transpose(0, 2, 1, 3).reshape(R, H * d_v)
    y = y + xf                                                # residual (f32)

    # LayerNorm (PyTorch default eps=1e-5), biased variance, f32.
    mean = jnp.mean(y, axis=-1, keepdims=True)
    var = jnp.mean((y - mean) ** 2, axis=-1, keepdims=True)
    y = (y - mean) * lax.rsqrt(var + eps_attn)
    y = y * ln1_g_ref[...] + ln1_b_ref[...]

    # --- position-wise FFN (dropout p=0.0 -> identity), d_inner lane-padded.
    h = jnp.dot(y.astype(compute_dtype), w1_ref[...],
                preferred_element_type=jnp.float32) + b1_ref[...]
    h = jnp.maximum(h, 0.0)
    z = jnp.dot(h.astype(compute_dtype), w2_ref[...],
                preferred_element_type=jnp.float32) + b2_ref[...]
    z = z + y                                                 # residual (f32)

    mean2 = jnp.mean(z, axis=-1, keepdims=True)
    var2 = jnp.mean((z - mean2) ** 2, axis=-1, keepdims=True)
    z = (z - mean2) * lax.rsqrt(var2 + eps_ffn)
    z = z * ln2_g_ref[...] + ln2_b_ref[...]

    out_ref[...] = z.reshape(bb, L, D).astype(out_ref.dtype)


# --------------------------------- wrapper -----------------------------------
def _choose_block_b(B, L):
    """Batch elements per grid step: aim for ~256 rows of M, divisor of B."""
    bb = max(1, min(B, max(1, 256 // max(L, 1))))
    while B % bb != 0:
        bb -= 1
    return bb


def encoder_layer(enc_input, attn_params, ffn_params,
                  *, n_head, d_k, d_v, d_inner,
                  compute_dtype=jnp.bfloat16):
    B, L, D = enc_input.shape
    HK, HV = n_head * d_k, n_head * d_v
    assert HV == D, "n_head * d_v must equal d_model for the residual add"

    scale = d_k ** (-0.5)
    # Fold the q-scale into the projection: (x@wq + bq)*s == x@(wq*s) + bq*s.
    wq = (attn_params["wq"] * scale).astype(compute_dtype)
    bq = attn_params["bq"] * scale
    wk = attn_params["wk"].astype(compute_dtype)
    bk = attn_params["bk"]
    wv = attn_params["wv"].astype(compute_dtype)
    bv = attn_params["bv"]

    # Lane-align d_inner (zero-padding is exact: relu(0)=0, padded w2 rows = 0).
    d_inner_p = ((d_inner + 127) // 128) * 128
    pad_i = d_inner_p - d_inner
    w1 = jnp.pad(ffn_params["w1"], ((0, 0), (0, pad_i))).astype(compute_dtype)
    b1 = jnp.pad(ffn_params["b1"], ((0, 0), (0, pad_i)))
    w2 = jnp.pad(ffn_params["w2"], ((0, pad_i), (0, 0))).astype(compute_dtype)
    b2 = ffn_params["b2"]

    # Precomputed strictly-upper-triangular additive causal mask (torch.tril).
    row = lax.broadcasted_iota(jnp.int32, (L, L), 0)
    col = lax.broadcasted_iota(jnp.int32, (L, L), 1)
    causal_add = jnp.where(col > row, jnp.float32(-10000.0), jnp.float32(0.0))

    block_b = _choose_block_b(B, L)
    grid = (B // block_b,)

    x_spec = pl.BlockSpec((block_b, L, D), lambda i: (i, 0, 0))
    rep2d = lambda shape: pl.BlockSpec(shape, lambda i: (0, 0))

    # Explicit VMEM budget: blocks (double-buffered) + in-kernel intermediates.
    f32b = 4
    cdb = jnp.dtype(compute_dtype).itemsize
    R, G = block_b * L, block_b * n_head
    block_io = (block_b * L * D * f32b + L * L * f32b
                + (2 * D * HK + D * HV) * cdb + (2 * HK + HV) * f32b
                + 2 * D * d_inner_p * cdb + (d_inner_p + D) * f32b
                + 4 * D * f32b
                + block_b * L * D * f32b
                + block_b * n_head * L * L * f32b)
    interm = (R * (3 * HK + 2 * D + 2 * d_inner_p) * f32b
              + G * L * (2 * d_k + d_v) * f32b
              + 3 * G * L * L * f32b)
    vmem_limit = int(min(max(2 * block_io + 2 * interm + (8 << 20), 32 << 20),
                         64 << 20))

    kernel = partial(encoder_layer_kernel,
                     block_b=block_b, n_head=n_head, d_k=d_k, d_v=d_v,
                     eps_attn=1e-5, eps_ffn=1e-6, compute_dtype=compute_dtype)

    out, attn = pl.pallas_call(
        kernel,
        grid=grid,
        in_specs=[x_spec,                         # enc_input batch-block
                  rep2d((L, L)),                  # causal additive mask
                  rep2d((D, HK)), rep2d((1, HK)),           # wq, bq (scaled)
                  rep2d((D, HK)), rep2d((1, HK)),           # wk, bk
                  rep2d((D, HV)), rep2d((1, HV)),           # wv, bv
                  rep2d((1, D)), rep2d((1, D)),             # attn LN gamma/beta
                  rep2d((D, d_inner_p)), rep2d((1, d_inner_p)),   # w1, b1
                  rep2d((d_inner_p, D)), rep2d((1, D)),           # w2, b2
                  rep2d((1, D)), rep2d((1, D))],            # ffn LN gamma/beta
        out_specs=(pl.BlockSpec((block_b, L, D), lambda i: (i, 0, 0)),
                   pl.BlockSpec((block_b, n_head, L, L), lambda i: (i, 0, 0, 0))),
        out_shape=(jax.ShapeDtypeStruct((B, L, D), jnp.float32),
                   jax.ShapeDtypeStruct((B, n_head, L, L), jnp.float32)),
        compiler_params=pltpu.CompilerParams(
            dimension_semantics=("parallel",),
            vmem_limit_bytes=vmem_limit),
    )(enc_input, causal_add,
      wq, bq, wk, bk, wv, bv,
      attn_params["ln_g"], attn_params["ln_b"],
      w1, b1, w2, b2,
      ffn_params["ln_g"], ffn_params["ln_b"])

    return out, attn


# ------------------------------ pure-JAX reference ----------------------------
def encoder_layer_ref(x, attn_params, ffn_params, *, n_head, d_k, d_v):
    B, L, D = x.shape
    scale = d_k ** (-0.5)

    def ln(v, g, b, eps):
        m = jnp.mean(v, -1, keepdims=True)
        var = jnp.mean((v - m) ** 2, -1, keepdims=True)
        return (v - m) / jnp.sqrt(var + eps) * g + b

    q = x @ attn_params["wq"] + attn_params["bq"]
    k = x @ attn_params["wk"] + attn_params["bk"]
    v = x @ attn_params["wv"] + attn_params["bv"]
    q = q.reshape(B, L, n_head, d_k).transpose(0, 2, 1, 3) * scale
    k = k.reshape(B, L, n_head, d_k).transpose(0, 2, 1, 3)
    v = v.reshape(B, L, n_head, d_v).transpose(0, 2, 1, 3)
    s = jnp.einsum('bhqc,bhkc->bhqk', q, k)
    row = lax.broadcasted_iota(jnp.int32, (L, L), 0)
    col = lax.broadcasted_iota(jnp.int32, (L, L), 1)
    s = s + jnp.where(col > row, jnp.float32(-10000.0), jnp.float32(0.0))
    p = jax.nn.softmax(s, axis=-1)
    ctx = jnp.einsum('bhqk,bhkc->bhqc', p, v)
    y = ctx.transpose(0, 2, 1, 3).reshape(B, L, -1) + x
    y = ln(y, attn_params["ln_g"], attn_params["ln_b"], 1e-5)
    h = jnp.maximum(y @ ffn_params["w1"] + ffn_params["b1"], 0.0)
    z = h @ ffn_params["w2"] + ffn_params["b2"] + y
    z = ln(z, ffn_params["ln_g"], ffn_params["ln_b"], 1e-6)
    return z, p


# --------------------------------- params ------------------------------------
def init_params(key, d_model, d_inner, n_head, d_k, d_v):
    def linear(k, fan_in, fan_out):
        k1, k2 = jax.random.split(k)
        bound = 1.0 / math.sqrt(fan_in)
        w = jax.random.uniform(k1, (fan_in, fan_out), jnp.float32, -bound, bound)
        b = jax.random.uniform(k2, (1, fan_out), jnp.float32, -bound, bound)
        return w, b

    keys = jax.random.split(key, 5)
    wq, bq = linear(keys[0], d_model, n_head * d_k)
    wk, bk = linear(keys[1], d_model, n_head * d_k)
    wv, bv = linear(keys[2], d_model, n_head * d_v)
    w1, b1 = linear(keys[3], d_model, d_inner)
    w2, b2 = linear(keys[4], d_inner, d_model)

    attn_params = dict(wq=wq, bq=bq, wk=wk, bk=bk, wv=wv, bv=bv,
                       ln_g=jnp.ones((1, d_model), jnp.float32),
                       ln_b=jnp.zeros((1, d_model), jnp.float32))
    ffn_params = dict(w1=w1, b1=b1, w2=w2, b2=b2,
                      ln_g=jnp.ones((1, d_model), jnp.float32),
                      ln_b=jnp.zeros((1, d_model), jnp.float32))
    return attn_params, ffn_params


if __name__ == "__main__":
    d_model, d_inner, n_head, d_k, d_v = 32, 64, 4, 8, 8   # n_head*d_v == d_model
    B, L = 2, 8

    key = jax.random.PRNGKey(0)
    k_param, k_in = jax.random.split(key)
    attn_params, ffn_params = init_params(k_param, d_model, d_inner,
                                          n_head, d_k, d_v)
    enc_input = jax.random.normal(k_in, (B, L, d_model), jnp.float32)

    enc_out, slf_attn = encoder_layer(enc_input, attn_params, ffn_params,
                                      n_head=n_head, d_k=d_k, d_v=d_v,
                                      d_inner=d_inner)
    jax.block_until_ready((enc_out, slf_attn))

    assert enc_out.shape == (B, L, d_model)
    assert slf_attn.shape == (B, n_head, L, L)
    assert bool(jnp.all(jnp.isfinite(enc_out))) and bool(jnp.all(jnp.isfinite(slf_attn)))

    # Compare against a pure-JAX f32 reference (loose tolerance: matmuls run
    # through the bf16 MXU path with f32 accumulation).
    ref_out, ref_attn = encoder_layer_ref(enc_input, attn_params, ffn_params,
                                          n_head=n_head, d_k=d_k, d_v=d_v)
    err_out = float(jnp.max(jnp.abs(enc_out - ref_out)))
    err_attn = float(jnp.max(jnp.abs(slf_attn - ref_attn)))
    assert err_out < 1e-1, f"enc_output mismatch: max abs err {err_out}"
    assert err_attn < 3e-2, f"attention map mismatch: max abs err {err_attn}"

    print("KERNEL_OK")
</pallas_src>

<mosaic_0001>
module attributes {stable_mosaic.version = 11 : i64} {
  func.func @encoder_layer_kernel(%arg0: i32, %arg1: memref<2x8x32xf32, #tpu.memory_space<vmem>>, %arg2: memref<8x8xf32, #tpu.memory_space<vmem>>, %arg3: memref<32x32xbf16, #tpu.memory_space<vmem>>, %arg4: memref<1x32xf32, #tpu.memory_space<vmem>>, %arg5: memref<32x32xbf16, #tpu.memory_space<vmem>>, %arg6: memref<1x32xf32, #tpu.memory_space<vmem>>, %arg7: memref<32x32xbf16, #tpu.memory_space<vmem>>, %arg8: memref<1x32xf32, #tpu.memory_space<vmem>>, %arg9: memref<1x32xf32, #tpu.memory_space<vmem>>, %arg10: memref<1x32xf32, #tpu.memory_space<vmem>>, %arg11: memref<32x128xbf16, #tpu.memory_space<vmem>>, %arg12: memref<1x128xf32, #tpu.memory_space<vmem>>, %arg13: memref<128x32xbf16, #tpu.memory_space<vmem>>, %arg14: memref<1x32xf32, #tpu.memory_space<vmem>>, %arg15: memref<1x32xf32, #tpu.memory_space<vmem>>, %arg16: memref<1x32xf32, #tpu.memory_space<vmem>>, %arg17: memref<2x8x32xf32, #tpu.memory_space<vmem>>, %arg18: memref<2x4x8x8xf32, #tpu.memory_space<vmem>>) attributes {dimension_semantics = [#tpu.dimension_semantics<parallel>], iteration_bounds = array<i64: 1>, scalar_prefetch = 0 : i64, scratch_operands = 0 : i64, tpu.core_type = #tpu.core_type<tc>, window_params = [{transform_indices = @transform_0, window_bounds = array<i64: 2, 8, 32>}, {pipeline_mode = #tpu.pipeline_mode<synchronous>, transform_indices = @transform_1, window_bounds = array<i64: 8, 8>}, {pipeline_mode = #tpu.pipeline_mode<synchronous>, transform_indices = @transform_2, window_bounds = array<i64: 32, 32>}, {pipeline_mode = #tpu.pipeline_mode<synchronous>, transform_indices = @transform_3, window_bounds = array<i64: 1, 32>}, {pipeline_mode = #tpu.pipeline_mode<synchronous>, transform_indices = @transform_4, window_bounds = array<i64: 32, 32>}, {pipeline_mode = #tpu.pipeline_mode<synchronous>, transform_indices = @transform_5, window_bounds = array<i64: 1, 32>}, {pipeline_mode = #tpu.pipeline_mode<synchronous>, transform_indices = @transform_6, window_bounds = array<i64: 32, 32>}, {pipeline_mode = #tpu.pipeline_mode<synchronous>, transform_indices = @transform_7, window_bounds = array<i64: 1, 32>}, {pipeline_mode = #tpu.pipeline_mode<synchronous>, transform_indices = @transform_8, window_bounds = array<i64: 1, 32>}, {pipeline_mode = #tpu.pipeline_mode<synchronous>, transform_indices = @transform_9, window_bounds = array<i64: 1, 32>}, {pipeline_mode = #tpu.pipeline_mode<synchronous>, transform_indices = @transform_10, window_bounds = array<i64: 32, 128>}, {pipeline_mode = #tpu.pipeline_mode<synchronous>, transform_indices = @transform_11, window_bounds = array<i64: 1, 128>}, {pipeline_mode = #tpu.pipeline_mode<synchronous>, transform_indices = @transform_12, window_bounds = array<i64: 128, 32>}, {pipeline_mode = #tpu.pipeline_mode<synchronous>, transform_indices = @transform_13, window_bounds = array<i64: 1, 32>}, {pipeline_mode = #tpu.pipeline_mode<synchronous>, transform_indices = @transform_14, window_bounds = array<i64: 1, 32>}, {pipeline_mode = #tpu.pipeline_mode<synchronous>, transform_indices = @transform_15, window_bounds = array<i64: 1, 32>}, {transform_indices = @transform_16, window_bounds = array<i64: 2, 8, 32>}, {transform_indices = @transform_17, window_bounds = array<i64: 2, 4, 8, 8>}]} {
    %c0 = arith.constant 0 : index
    %c0_0 = arith.constant 0 : index
    %c0_1 = arith.constant 0 : index
    %0 = vector.load %arg1[%c0, %c0_0, %c0_1] : memref<2x8x32xf32, #tpu.memory_space<vmem>>, vector<2x8x32xf32>
    %1 = vector.shape_cast %0 : vector<2x8x32xf32> to vector<16x32xf32>
    %2 = arith.truncf %1 : vector<16x32xf32> to vector<16x32xbf16>
    %c0_2 = arith.constant 0 : index
    %c0_3 = arith.constant 0 : index
    %3 = vector.load %arg3[%c0_2, %c0_3] : memref<32x32xbf16, #tpu.memory_space<vmem>>, vector<32x32xbf16>
    %cst = arith.constant dense<0.000000e+00> : vector<16x32xf32>
    %4 = tpu.matmul %2, %3, %cst {dimension_numbers = #tpu.dot_dimension_numbers<[1], [0], [0], [1], [0, 0, 1, 1], [], []>} : vector<16x32xbf16>, vector<32x32xbf16>, vector<16x32xf32> -> vector<16x32xf32>
    %c0_4 = arith.constant 0 : index
    %c0_5 = arith.constant 0 : index
    %5 = vector.load %arg4[%c0_4, %c0_5] : memref<1x32xf32, #tpu.memory_space<vmem>>, vector<1x32xf32>
    %6 = vector.broadcast %5 : vector<1x32xf32> to vector<16x32xf32>
    %7 = arith.addf %4, %6 : vector<16x32xf32>
    %c0_6 = arith.constant 0 : index
    %c0_7 = arith.constant 0 : index
    %8 = vector.load %arg5[%c0_6, %c0_7] : memref<32x32xbf16, #tpu.memory_space<vmem>>, vector<32x32xbf16>
    %cst_8 = arith.constant dense<0.000000e+00> : vector<16x32xf32>
    %9 = tpu.matmul %2, %8, %cst_8 {dimension_numbers = #tpu.dot_dimension_numbers<[1], [0], [0], [1], [0, 0, 1, 1], [], []>} : vector<16x32xbf16>, vector<32x32xbf16>, vector<16x32xf32> -> vector<16x32xf32>
    %c0_9 = arith.constant 0 : index
    %c0_10 = arith.constant 0 : index
    %10 = vector.load %arg6[%c0_9, %c0_10] : memref<1x32xf32, #tpu.memory_space<vmem>>, vector<1x32xf32>
    %11 = vector.broadcast %10 : vector<1x32xf32> to vector<16x32xf32>
    %12 = arith.addf %9, %11 : vector<16x32xf32>
    %c0_11 = arith.constant 0 : index
    %c0_12 = arith.constant 0 : index
    %13 = vector.load %arg7[%c0_11, %c0_12] : memref<32x32xbf16, #tpu.memory_space<vmem>>, vector<32x32xbf16>
    %cst_13 = arith.constant dense<0.000000e+00> : vector<16x32xf32>
    %14 = tpu.matmul %2, %13, %cst_13 {dimension_numbers = #tpu.dot_dimension_numbers<[1], [0], [0], [1], [0, 0, 1, 1], [], []>} : vector<16x32xbf16>, vector<32x32xbf16>, vector<16x32xf32> -> vector<16x32xf32>
    %c0_14 = arith.constant 0 : index
    %c0_15 = arith.constant 0 : index
    %15 = vector.load %arg8[%c0_14, %c0_15] : memref<1x32xf32, #tpu.memory_space<vmem>>, vector<1x32xf32>
    %16 = vector.broadcast %15 : vector<1x32xf32> to vector<16x32xf32>
    %17 = arith.addf %14, %16 : vector<16x32xf32>
    %18 = vector.shape_cast %7 : vector<16x32xf32> to vector<2x8x4x8xf32>
    %19 = tpu.transpose %18, [0, 2, 1, 3] : vector<2x8x4x8xf32> -> vector<2x4x8x8xf32>
    %20 = vector.shape_cast %19 : vector<2x4x8x8xf32> to vector<8x8x8xf32>
    %21 = vector.shape_cast %12 : vector<16x32xf32> to vector<2x8x4x8xf32>
    %22 = tpu.transpose %21, [0, 2, 1, 3] : vector<2x8x4x8xf32> -> vector<2x4x8x8xf32>
    %23 = vector.shape_cast %22 : vector<2x4x8x8xf32> to vector<8x8x8xf32>
    %24 = vector.shape_cast %17 : vector<16x32xf32> to vector<2x8x4x8xf32>
    %25 = tpu.transpose %24, [0, 2, 1, 3] : vector<2x8x4x8xf32> -> vector<2x4x8x8xf32>
    %26 = vector.shape_cast %25 : vector<2x4x8x8xf32> to vector<8x8x8xf32>
    %27 = arith.truncf %20 : vector<8x8x8xf32> to vector<8x8x8xbf16>
    %28 = arith.truncf %23 : vector<8x8x8xf32> to vector<8x8x8xbf16>
    "tpu.trace_start"() <{level = 10 : i32, message = "glc,gmc->glm"}> : () -> ()
    %cst_16 = arith.constant dense<0.000000e+00> : vector<8x8x8xf32>
    %29 = tpu.matmul %27, %28, %cst_16 {dimension_numbers = #tpu.dot_dimension_numbers<[2], [2], [1], [1], [0, 0, 0, 1, 1, 1], [0], [0]>} : vector<8x8x8xbf16>, vector<8x8x8xbf16>, vector<8x8x8xf32> -> vector<8x8x8xf32>
    "tpu.trace_stop"() : () -> ()
    %c0_17 = arith.constant 0 : index
    %c0_18 = arith.constant 0 : index
    %30 = vector.load %arg2[%c0_17, %c0_18] : memref<8x8xf32, #tpu.memory_space<vmem>>, vector<8x8xf32>
    %31 = vector.shape_cast %30 : vector<8x8xf32> to vector<1x8x8xf32>
    %32 = vector.broadcast %31 : vector<1x8x8xf32> to vector<8x8x8xf32>
    %33 = arith.addf %29, %32 : vector<8x8x8xf32>
    %cst_19 = arith.constant dense<0xFF800000> : vector<8x8xf32>
    %34 = vector.multi_reduction <maximumf>, %33, %cst_19 [2] : vector<8x8x8xf32> to vector<8x8xf32>
    %35 = vector.shape_cast %34 : vector<8x8xf32> to vector<8x8x1xf32>
    %36 = vector.broadcast %35 : vector<8x8x1xf32> to vector<8x8x8xf32>
    %37 = arith.subf %33, %36 : vector<8x8x8xf32>
    %38 = math.exp %37 : vector<8x8x8xf32>
    %cst_20 = arith.constant dense<0.000000e+00> : vector<8x8xf32>
    %39 = vector.multi_reduction <add>, %38, %cst_20 [2] : vector<8x8x8xf32> to vector<8x8xf32>
    %40 = vector.shape_cast %39 : vector<8x8xf32> to vector<8x8x1xf32>
    %41 = vector.broadcast %40 : vector<8x8x1xf32> to vector<8x8x8xf32>
    %42 = arith.divf %38, %41 : vector<8x8x8xf32>
    %43 = vector.shape_cast %42 : vector<8x8x8xf32> to vector<2x4x8x8xf32>
    %c0_21 = arith.constant 0 : index
    %c0_22 = arith.constant 0 : index
    %c0_23 = arith.constant 0 : index
    %c0_24 = arith.constant 0 : index
    %44 = vector.load %arg18[%c0_21, %c0_22, %c0_23, %c0_24] : memref<2x4x8x8xf32, #tpu.memory_space<vmem>>, vector<2x4x8x8xf32>
    tpu.vector_store %arg18[%c0_21, %c0_22, %c0_23, %c0_24], %43 {strides = array<i32>} : memref<2x4x8x8xf32, #tpu.memory_space<vmem>>, vector<2x4x8x8xf32>,
    %45 = arith.truncf %42 : vector<8x8x8xf32> to vector<8x8x8xbf16>
    %46 = arith.truncf %26 : vector<8x8x8xf32> to vector<8x8x8xbf16>
    "tpu.trace_start"() <{level = 10 : i32, message = "glm,gmc->glc"}> : () -> ()
    %cst_25 = arith.constant dense<0.000000e+00> : vector<8x8x8xf32>
    %47 = tpu.matmul %45, %46, %cst_25 {dimension_numbers = #tpu.dot_dimension_numbers<[2], [1], [1], [2], [0, 0, 0, 1, 1, 2], [0], [0]>} : vector<8x8x8xbf16>, vector<8x8x8xbf16>, vector<8x8x8xf32> -> vector<8x8x8xf32>
    "tpu.trace_stop"() : () -> ()
    %48 = vector.shape_cast %47 : vector<8x8x8xf32> to vector<2x4x8x8xf32>
    %49 = tpu.transpose %48, [0, 2, 1, 3] : vector<2x4x8x8xf32> -> vector<2x8x4x8xf32>
    %50 = vector.shape_cast %49 : vector<2x8x4x8xf32> to vector<16x32xf32>
    %51 = arith.addf %50, %1 : vector<16x32xf32>
    %cst_26 = arith.constant dense<0.000000e+00> : vector<16xf32>
    %52 = vector.multi_reduction <add>, %51, %cst_26 [1] : vector<16x32xf32> to vector<16xf32>
    %53 = vector.shape_cast %52 : vector<16xf32> to vector<16x1xf32>
    %cst_27 = arith.constant 3.200000e+01 : f32
    %54 = vector.broadcast %cst_27 : f32 to vector<16x1xf32>
    %55 = arith.divf %53, %54 : vector<16x1xf32>
    %56 = vector.broadcast %55 : vector<16x1xf32> to vector<16x32xf32>
    %57 = arith.subf %51, %56 : vector<16x32xf32>
    %58 = arith.mulf %57, %57 : vector<16x32xf32>
    %cst_28 = arith.constant dense<0.000000e+00> : vector<16xf32>
    %59 = vector.multi_reduction <add>, %58, %cst_28 [1] : vector<16x32xf32> to vector<16xf32>
    %60 = vector.shape_cast %59 : vector<16xf32> to vector<16x1xf32>
    %cst_29 = arith.constant 3.200000e+01 : f32
    %61 = vector.broadcast %cst_29 : f32 to vector<16x1xf32>
    %62 = arith.divf %60, %61 : vector<16x1xf32>
    %63 = vector.broadcast %55 : vector<16x1xf32> to vector<16x32xf32>
    %64 = arith.subf %51, %63 : vector<16x32xf32>
    %cst_30 = arith.constant 9.99999974E-6 : f32
    %65 = vector.broadcast %cst_30 : f32 to vector<16x1xf32>
    %66 = arith.addf %62, %65 : vector<16x1xf32>
    %67 = math.rsqrt %66 : vector<16x1xf32>
    %68 = vector.broadcast %67 : vector<16x1xf32> to vector<16x32xf32>
    %69 = arith.mulf %64, %68 : vector<16x32xf32>
    %c0_31 = arith.constant 0 : index
    %c0_32 = arith.constant 0 : index
    %70 = vector.load %arg9[%c0_31, %c0_32] : memref<1x32xf32, #tpu.memory_space<vmem>>, vector<1x32xf32>
    %71 = vector.broadcast %70 : vector<1x32xf32> to vector<16x32xf32>
    %72 = arith.mulf %69, %71 : vector<16x32xf32>
    %c0_33 = arith.constant 0 : index
    %c0_34 = arith.constant 0 : index
    %73 = vector.load %arg10[%c0_33, %c0_34] : memref<1x32xf32, #tpu.memory_space<vmem>>, vector<1x32xf32>
    %74 = vector.broadcast %73 : vector<1x32xf32> to vector<16x32xf32>
    %75 = arith.addf %72, %74 : vector<16x32xf32>
    %76 = arith.truncf %75 : vector<16x32xf32> to vector<16x32xbf16>
    %c0_35 = arith.constant 0 : index
    %c0_36 = arith.constant 0 : index
    %77 = vector.load %arg11[%c0_35, %c0_36] : memref<32x128xbf16, #tpu.memory_space<vmem>>, vector<32x128xbf16>
    %cst_37 = arith.constant dense<0.000000e+00> : vector<16x128xf32>
    %78 = tpu.matmul %76, %77, %cst_37 {dimension_numbers = #tpu.dot_dimension_numbers<[1], [0], [0], [1], [0, 0, 1, 1], [], []>} : vector<16x32xbf16>, vector<32x128xbf16>, vector<16x128xf32> -> vector<16x128xf32>
    %c0_38 = arith.constant 0 : index
    %c0_39 = arith.constant 0 : index
    %79 = vector.load %arg12[%c0_38, %c0_39] : memref<1x128xf32, #tpu.memory_space<vmem>>, vector<1x128xf32>
    %80 = vector.broadcast %79 : vector<1x128xf32> to vector<16x128xf32>
    %81 = arith.addf %78, %80 : vector<16x128xf32>
    %cst_40 = arith.constant 0.000000e+00 : f32
    %82 = vector.broadcast %cst_40 : f32 to vector<16x128xf32>
    %83 = arith.maximumf %81, %82 : vector<16x128xf32>
    %84 = arith.truncf %83 : vector<16x128xf32> to vector<16x128xbf16>
    %c0_41 = arith.constant 0 : index
    %c0_42 = arith.constant 0 : index
    %85 = vector.load %arg13[%c0_41, %c0_42] : memref<128x32xbf16, #tpu.memory_space<vmem>>, vector<128x32xbf16>
    %cst_43 = arith.constant dense<0.000000e+00> : vector<16x32xf32>
    %86 = tpu.matmul %84, %85, %cst_43 {dimension_numbers = #tpu.dot_dimension_numbers<[1], [0], [0], [1], [0, 0, 1, 1], [], []>} : vector<16x128xbf16>, vector<128x32xbf16>, vector<16x32xf32> -> vector<16x32xf32>
    %c0_44 = arith.constant 0 : index
    %c0_45 = arith.constant 0 : index
    %87 = vector.load %arg14[%c0_44, %c0_45] : memref<1x32xf32, #tpu.memory_space<vmem>>, vector<1x32xf32>
    %88 = vector.broadcast %87 : vector<1x32xf32> to vector<16x32xf32>
    %89 = arith.addf %86, %88 : vector<16x32xf32>
    %90 = arith.addf %89, %75 : vector<16x32xf32>
    %cst_46 = arith.constant dense<0.000000e+00> : vector<16xf32>
    %91 = vector.multi_reduction <add>, %90, %cst_46 [1] : vector<16x32xf32> to vector<16xf32>
    %92 = vector.shape_cast %91 : vector<16xf32> to vector<16x1xf32>
    %cst_47 = arith.constant 3.200000e+01 : f32
    %93 = vector.broadcast %cst_47 : f32 to vector<16x1xf32>
    %94 = arith.divf %92, %93 : vector<16x1xf32>
    %95 = vector.broadcast %94 : vector<16x1xf32> to vector<16x32xf32>
    %96 = arith.subf %90, %95 : vector<16x32xf32>
    %97 = arith.mulf %96, %96 : vector<16x32xf32>
    %cst_48 = arith.constant dense<0.000000e+00> : vector<16xf32>
    %98 = vector.multi_reduction <add>, %97, %cst_48 [1] : vector<16x32xf32> to vector<16xf32>
    %99 = vector.shape_cast %98 : vector<16xf32> to vector<16x1xf32>
    %cst_49 = arith.constant 3.200000e+01 : f32
    %100 = vector.broadcast %cst_49 : f32 to vector<16x1xf32>
    %101 = arith.divf %99, %100 : vector<16x1xf32>
    %102 = vector.broadcast %94 : vector<16x1xf32> to vector<16x32xf32>
    %103 = arith.subf %90, %102 : vector<16x32xf32>
    %cst_50 = arith.constant 9.99999997E-7 : f32
    %104 = vector.broadcast %cst_50 : f32 to vector<16x1xf32>
    %105 = arith.addf %101, %104 : vector<16x1xf32>
    %106 = math.rsqrt %105 : vector<16x1xf32>
    %107 = vector.broadcast %106 : vector<16x1xf32> to vector<16x32xf32>
    %108 = arith.mulf %103, %107 : vector<16x32xf32>
    %c0_51 = arith.constant 0 : index
    %c0_52 = arith.constant 0 : index
    %109 = vector.load %arg15[%c0_51, %c0_52] : memref<1x32xf32, #tpu.memory_space<vmem>>, vector<1x32xf32>
    %110 = vector.broadcast %109 : vector<1x32xf32> to vector<16x32xf32>
    %111 = arith.mulf %108, %110 : vector<16x32xf32>
    %c0_53 = arith.constant 0 : index
    %c0_54 = arith.constant 0 : index
    %112 = vector.load %arg16[%c0_53, %c0_54] : memref<1x32xf32, #tpu.memory_space<vmem>>, vector<1x32xf32>
    %113 = vector.broadcast %112 : vector<1x32xf32> to vector<16x32xf32>
    %114 = arith.addf %111, %113 : vector<16x32xf32>
    %115 = vector.shape_cast %114 : vector<16x32xf32> to vector<2x8x32xf32>
    %c0_55 = arith.constant 0 : index
    %c0_56 = arith.constant 0 : index
    %c0_57 = arith.constant 0 : index
    %116 = vector.load %arg17[%c0_55, %c0_56, %c0_57] : memref<2x8x32xf32, #tpu.memory_space<vmem>>, vector<2x8x32xf32>
    tpu.vector_store %arg17[%c0_55, %c0_56, %c0_57], %115 {strides = array<i32>} : memref<2x8x32xf32, #tpu.memory_space<vmem>>, vector<2x8x32xf32>,
    return
  }
  func.func @transform_0(%arg0: i32) -> (i32, i32, i32) {
    %c0_i32 = arith.constant 0 : i32
    %c0_i32_0 = arith.constant 0 : i32
    %c0_i32_1 = arith.constant 0 : i32
    return %arg0, %c0_i32, %c0_i32_0 : i32, i32, i32
  }
  func.func @transform_1(%arg0: i32) -> (i32, i32) {
    %c0_i32 = arith.constant 0 : i32
    %c0_i32_0 = arith.constant 0 : i32
    %c0_i32_1 = arith.constant 0 : i32
    return %c0_i32, %c0_i32_0 : i32, i32
  }
  func.func @transform_2(%arg0: i32) -> (i32, i32) {
    %c0_i32 = arith.constant 0 : i32
    %c0_i32_0 = arith.constant 0 : i32
    %c0_i32_1 = arith.constant 0 : i32
    return %c0_i32, %c0_i32_0 : i32, i32
  }
  func.func @transform_3(%arg0: i32) -> (i32, i32) {
    %c0_i32 = arith.constant 0 : i32
    %c0_i32_0 = arith.constant 0 : i32
    %c0_i32_1 = arith.constant 0 : i32
    return %c0_i32, %c0_i32_0 : i32, i32
  }
  func.func @transform_4(%arg0: i32) -> (i32, i32) {
    %c0_i32 = arith.constant 0 : i32
    %c0_i32_0 = arith.constant 0 : i32
    %c0_i32_1 = arith.constant 0 : i32
    return %c0_i32, %c0_i32_0 : i32, i32
  }
  func.func @transform_5(%arg0: i32) -> (i32, i32) {
    %c0_i32 = arith.constant 0 : i32
    %c0_i32_0 = arith.constant 0 : i32
    %c0_i32_1 = arith.constant 0 : i32
    return %c0_i32, %c0_i32_0 : i32, i32
  }
  func.func @transform_6(%arg0: i32) -> (i32, i32) {
    %c0_i32 = arith.constant 0 : i32
    %c0_i32_0 = arith.constant 0 : i32
    %c0_i32_1 = arith.constant 0 : i32
    return %c0_i32, %c0_i32_0 : i32, i32
  }
  func.func @transform_7(%arg0: i32) -> (i32, i32) {
    %c0_i32 = arith.constant 0 : i32
    %c0_i32_0 = arith.constant 0 : i32
    %c0_i32_1 = arith.constant 0 : i32
    return %c0_i32, %c0_i32_0 : i32, i32
  }
  func.func @transform_8(%arg0: i32) -> (i32, i32) {
    %c0_i32 = arith.constant 0 : i32
    %c0_i32_0 = arith.constant 0 : i32
    %c0_i32_1 = arith.constant 0 : i32
    return %c0_i32, %c0_i32_0 : i32, i32
  }
  func.func @transform_9(%arg0: i32) -> (i32, i32) {
    %c0_i32 = arith.constant 0 : i32
    %c0_i32_0 = arith.constant 0 : i32
    %c0_i32_1 = arith.constant 0 : i32
    return %c0_i32, %c0_i32_0 : i32, i32
  }
  func.func @transform_10(%arg0: i32) -> (i32, i32) {
    %c0_i32 = arith.constant 0 : i32
    %c0_i32_0 = arith.constant 0 : i32
    %c0_i32_1 = arith.constant 0 : i32
    return %c0_i32, %c0_i32_0 : i32, i32
  }
  func.func @transform_11(%arg0: i32) -> (i32, i32) {
    %c0_i32 = arith.constant 0 : i32
    %c0_i32_0 = arith.constant 0 : i32
    %c0_i32_1 = arith.constant 0 : i32
    return %c0_i32, %c0_i32_0 : i32, i32
  }
  func.func @transform_12(%arg0: i32) -> (i32, i32) {
    %c0_i32 = arith.constant 0 : i32
    %c0_i32_0 = arith.constant 0 : i32
    %c0_i32_1 = arith.constant 0 : i32
    return %c0_i32, %c0_i32_0 : i32, i32
  }
  func.func @transform_13(%arg0: i32) -> (i32, i32) {
    %c0_i32 = arith.constant 0 : i32
    %c0_i32_0 = arith.constant 0 : i32
    %c0_i32_1 = arith.constant 0 : i32
    return %c0_i32, %c0_i32_0 : i32, i32
  }
  func.func @transform_14(%arg0: i32) -> (i32, i32) {
    %c0_i32 = arith.constant 0 : i32
    %c0_i32_0 = arith.constant 0 : i32
    %c0_i32_1 = arith.constant 0 : i32
    return %c0_i32, %c0_i32_0 : i32, i32
  }
  func.func @transform_15(%arg0: i32) -> (i32, i32) {
    %c0_i32 = arith.constant 0 : i32
    %c0_i32_0 = arith.constant 0 : i32
    %c0_i32_1 = arith.constant 0 : i32
    return %c0_i32, %c0_i32_0 : i32, i32
  }
  func.func @transform_16(%arg0: i32) -> (i32, i32, i32) {
    %c0_i32 = arith.constant 0 : i32
    %c0_i32_0 = arith.constant 0 : i32
    %c0_i32_1 = arith.constant 0 : i32
    return %arg0, %c0_i32, %c0_i32_0 : i32, i32, i32
  }
  func.func @transform_17(%arg0: i32) -> (i32, i32, i32, i32) {
    %c0_i32 = arith.constant 0 : i32
    %c0_i32_0 = arith.constant 0 : i32
    %c0_i32_1 = arith.constant 0 : i32
    %c0_i32_2 = arith.constant 0 : i32
    return %arg0, %c0_i32, %c0_i32_0, %c0_i32_1 : i32, i32, i32, i32
  }
}

</mosaic_0001>

<bundles_post_ra>
// kernel: tpu_custom_call.1
= control target key start
LH: loop header
LB: loop body
LE: loop exit
PB: predicated region body
PF: predicated region fallthrough
CT: control target
= control target key end

     0   :  { %s3682_s0 = inlined_call_operand.vmem [shape: f32[2,8,32], index: 0, kind: input, shape index: {}]   ;;  %s3683_s1 = inlined_call_operand.hbm [shape: f32[8,8], index: 1, kind: input, shape index: {}]   ;;  %s3684_s2 = inlined_call_operand.vmem [shape: bf16[32,32], index: 2, kind: input, shape index: {}]   ;;  %s3685_s3 = inlined_call_operand.vmem [shape: f32[1,32], index: 3, kind: input, shape index: {}]   ;;  %s3686_s4 = inlined_call_operand.vmem [shape: bf16[32,32], index: 4, kind: input, shape index: {}]   ;;  %s3687_s5 = inlined_call_operand.vmem [shape: f32[1,32], index: 5, kind: input, shape index: {}]   ;;  %s3688_s6 = inlined_call_operand.vmem [shape: bf16[32,32], index: 6, kind: input, shape index: {}]   ;;  %s3689_s7 = inlined_call_operand.vmem [shape: f32[1,32], index: 7, kind: input, shape index: {}]   ;;  %s3690_s8 = inlined_call_operand.vmem [shape: f32[1,32], index: 8, kind: input, shape index: {}]   ;;  %s3691_s9 = inlined_call_operand.vmem [shape: f32[1,32], index: 9, kind: input, shape index: {}]   ;;  %s3692_s10 = inlined_call_operand.vmem [shape: bf16[32,128], index: 10, kind: input, shape index: {}]   ;;  %s3693_s11 = inlined_call_operand.vmem [shape: f32[1,128], index: 11, kind: input, shape index: {}]   ;;  %s3694_s12 = inlined_call_operand.vmem [shape: bf16[128,32], index: 12, kind: input, shape index: {}]   ;;  %s3695_s13 = inlined_call_operand.vmem [shape: f32[1,32], index: 13, kind: input, shape index: {}]   ;;  %s3696_s14 = inlined_call_operand.vmem [shape: f32[1,32], index: 14, kind: input, shape index: {}]   ;;  %s3697_s15 = inlined_call_operand.vmem [shape: f32[1,32], index: 15, kind: input, shape index: {}]   ;;  %s3698_s16 = inlined_call_operand.hbm [shape: f32[2,8,32], index: 16, kind: output, shape index: {0}]   ;;  %s3699_s17 = inlined_call_operand.hbm [shape: f32[2,4,8,8], index: 17, kind: output, shape index: {1}]  }
   0x1   :  { %3702 = sst [smem:[#allocation11_spill]] %s3682_s0 }
   0x2   :  { %3703 = sst [smem:[#allocation12_spill]] %s3683_s1 }
   0x3   :  { %23 = vsyncpa [#allocation3], 0 }
   0x4   :  { %24 = vsyncpa [#allocation4], 0 }
   0x5   :  { %25 = vsyncpa [#allocation7], 0  ;;  %s3033_s24 = smov [#allocation2]   ;;  %s3704_s28 = sld [smem:[#allocation12_spill]] }
   0x6   :  { %s34_s25 = sshll.u32 %s3033_s24, 4  ;;  %s35_s25 = int_to_ptr.vmem [resolvable:$true] %s34_s25 }
   0xb   :  { %s2961_s29 = scalar_lea.hbm %s3704_s28, 128 }
   0xc   :  { %p2962_p0 = scmp.ne.s32.totalorder %s3704_s28, %s2961_s29  ;;  %p2965_p1 = scmp.lt.u32.totalorder %s2961_s29, %s3704_s28 }
   0xe   :  { %p2967_p2 = pnand %p2965_p1, %p2962_p0 }
  0x10   :  { %2970 = shalt.err (!%p2967_p2)
}
  0x11   :  { %s2971_s1 = scalar_lea.vmem %s35_s25, 128  ;;  %p2976_p4 = scmp.lt.s32.totalorder %s35_s25, %s35_s25 }
  0x12   :  { %p2972_p3 = scmp.ne.s32.totalorder %s35_s25, %s2971_s1  ;;  %p2977_p5 = scmp.lt.s32.totalorder %s2971_s1, %s2971_s1 }
  0x14   :  { %p2978_p6 = por %p2977_p5, %p2976_p4 }
  0x16   :  { %p2979_p7 = pnand %p2978_p6, %p2972_p3 }
  0x18   :  { %2982 = shalt.err (!%p2979_p7)
}
  0x19   :  { %37 = dma.hbm_to_vmem [thread:$0]  %s3704_s28, 128, %s35_s25, [#allocation3]  }
  0x1a   :  { %3027 = dma.done.wait [#allocation3], 128  }
  0x1b   :  { %3028 = vsyncadd [#allocation3], 4294967168  ;;  %v3034_v0 = vmov 0.0   ;;  %vm3035_vm0 = vmmov 0   ;;  %v2903_v1 = vld [vmem:[%s3684_s2] sm:$0xff]   ;;  %v2904_v2 = vld [vmem:[%s3684_s2 + $0x8] sm:$0xff]   ;;  %v294_v26 = vlaneseq }
  0x1c   :  { %2741 = vmatprep.subr.bf16.mxu1 %v3034_v0  ;;  %2745 = vmatprep.mubr.msk.bf16.mxu1 %vm3035_vm0, %v3034_v0  ;;  %s3705_s28 = sld [smem:[#allocation11_spill]]  ;;  %vm96_vm1 = vcmask 261120   ;;  %v2905_v5 = vld [vmem:[%s3686_s4] sm:$0xff]   ;;  %v2906_v7 = vld [vmem:[%s3686_s4 + $0x8] sm:$0xff]   ;;  %s3036_s25 = smov 104   ;;  %vm1162_vm2 = vcmask 64512  }
  0x1d   :  { %2771 = vmatprep.subr.bf16.mxu0 %v3034_v0  ;;  %2773 = vmatprep.mubr.msk.bf16.mxu0 %vm3035_vm0, %v3034_v0  ;;  %v2907_v8 = vld [vmem:[%s3688_s6] sm:$0xff]   ;;  %v2908_v9 = vld [vmem:[%s3688_s6 + $0x8] sm:$0xff]   ;;  %s3037_s26 = smov 120   ;;  %s3038_s27 = smov 112   ;;  %v3039_v24 = vmov 1983009808  }
  0x1e   :  { %2742 = vmatpush3.bf16.msra.mxu1 %v2903_v1  ;;  %v2631_v14 = vld [vmem:[%s3687_s5] ss:$0 sm:$0xff]  ;;  %v292_v25 = vunpack.c.l.s4 %v3039_v24  ;;  %v3040_v28 = vmov 1934713408   ;;  %v295_v32 = vshrl.u32 %v294_v26, 7  ;;  %vm1646_vm3 = vcmask 1043456  }
  0x1f   :  { %2743 = vmatprep.subr.bf16.mxu1 %v3034_v0  ;;  %v2627_v18 = vld [vmem:[%s3685_s3] ss:$0 sm:$0xff]  ;;  %v324_v29 = vunpack.c.l.s4 %v3040_v28  ;;  %s3042_s29 = smov 16   ;;  %s3043_s0 = smov 24   ;;  %vm2310_vm4 = vcmask 130048   ;;  %vm2313_vm5 = vcmask 195584  }
  0x20   :  { %v2635_v27 = vld [vmem:[%s3689_s7] ss:$0 sm:$0xff]  ;;  %v293_v31 = vunpack.c.0.s8 %v292_v25  ;;  %s3041_s7 = smov 8  }
  0x21   :  { %v325_v38 = vunpack.c.0.s8 %v324_v29 }
  0x22   :  { %v70_v3 = vld [vmem:[%s3705_s28] sm:$0xff]  ;;  %v71_v4 = vld [vmem:[%s3705_s28 + $0x8] sm:$0xff]  ;;  %2744 = vmatpush3.bf16.msra.mxu1 %v2904_v2  ;;  %v3231_v41 = vsub.s32 %v293_v31, %v295_v32 }
  0x23   :  { %v72_v6 = vpack.c.bf16 %v71_v4, %v70_v3  ;;  %2749 = vmatprep.subr.bf16.mxu1 %v3034_v0  ;;  %v3233_v48 = vsub.s32 %v325_v38, %v295_v32 }
  0x25   :  { %2746 = vmatmul.mubr.msk.bf16.vlgmr.msra.gmra.mrb[0].mxu1 %vm96_vm1, %v72_v6 }
  0x26   :  { %2750 = vmatpush3.bf16.msra.mxu1 %v2905_v5  ;;  %2753 = vmatprep.mubr.msk.bf16.mxu1 %vm3035_vm0, %v3034_v0 }
  0x27   :  { %2751 = vmatprep.subr.bf16.mxu1 %v3034_v0 }
  0x2a   :  { %2752 = vmatpush3.bf16.msra.mxu1 %v2906_v7 }
  0x2b   :  { %2757 = vmatprep.subr.bf16.mxu1 %v3034_v0 }
  0x2d   :  { %2754 = vmatmul.mubr.msk.bf16.vlgmr.msra.gmra.mrb[4].mxu1 %vm96_vm1, %v72_v6 }
  0x2e   :  { %2761 = vmatprep.mubr.msk.bf16.mxu1 %vm3035_vm0, %v3034_v0  ;;  %2758 = vmatpush3.bf16.msra.mxu1 %v2907_v8 }
  0x2f   :  { %2759 = vmatprep.subr.bf16.mxu1 %v3034_v0 }
  0x32   :  { %2760 = vmatpush3.bf16.msra.mxu1 %v2908_v9 }
  0x33   :  { %2765 = vmatprep.subr.bf16.mxu1 %v3034_v0 }
  0x35   :  { %2762 = vmatmul.mubr.msk.bf16.vlgmr.msra.gmra.mrb[8].mxu1 %vm96_vm1, %v72_v6 }
  0x36   :  { %2767 = vmatprep.mubr.msk.bf16.mxu1 %vm3035_vm0, %v3034_v0 }
  0xf8   :  { %v134_v10 = vpop.f32.mrb[0].mxu1 }
  0xf9   :  { %v2747_v11 = vpop.f32.mrb[1].mxu1  ;;  %v135_v21 = vadd.f32 %v2627_v18, %v134_v10 }
  0xfa   :  { %v137_v12 = vpop.f32.mrb[2].mxu1 }
  0xfb   :  { %v2748_v13 = vpop.f32.mrb[3].mxu1  ;;  %v3212_v23 = vadd.f32 %v2627_v18, %v137_v12 }
 0x100   :  { %v198_v15 = vpop.f32.mrb[4].mxu1 }
 0x101   :  { %v199_v16 = vadd.f32 %v2631_v14, %v198_v15  ;;  %v2755_v17 = vpop.f32.mrb[5].mxu1 }
 0x102   :  { %v201_v19 = vpop.f32.mrb[6].mxu1 }
 0x103   :  { %575 = vrot.lane.b32.xlu1 %v199_v16, %s3036_s25  ;;  %563 = vrot.lane.b32.xlu0 %v199_v16, %s3037_s26  ;;  %v2756_v20 = vpop.f32.mrb[7].mxu1  ;;  %v3206_v22 = vadd.f32 %v2631_v14, %v201_v19 }
 0x107   :  { %271 = vrot.lane.b32.xlu1 %v135_v21, %s3037_s26  ;;  %569 = vrot.lane.b32.xlu0 %v199_v16, %s3038_s27 }
 0x108   :  { %v262_v30 = vpop.f32.mrb[8].mxu1 }
 0x109   :  { %v3225_v33 = vadd.f32 %v2635_v27, %v262_v30  ;;  %v2763_v34 = vpop.f32.mrb[9].mxu1 }
 0x10a   :  { %v265_v37 = vpop.f32.mrb[10].mxu1 }
 0x10b   :  { %283 = vrot.lane.b32.xlu1 %v135_v21, %s3036_s25  ;;  %277 = vrot.lane.b32.xlu0 %v135_v21, %s3038_s27  ;;  %v3229_v39 = vadd.f32 %v2635_v27, %v265_v37  ;;  %v2764_v40 = vpop.f32.mrb[11].mxu1 }
 0x10f   :  { %571 = vrot.lane.b32.xlu1 %v3206_v22, %s3038_s27  ;;  %565 = vrot.lane.b32.xlu0 %v3206_v22, %s3037_s26 }
 0x113   :  { %273 = vrot.lane.b32.xlu1 %v3212_v23, %s3037_s26  ;;  %577 = vrot.lane.b32.xlu0 %v3206_v22, %s3036_s25 }
 0x117   :  { %285 = vrot.lane.b32.xlu1 %v3212_v23, %s3036_s25  ;;  %279 = vrot.lane.b32.xlu0 %v3212_v23, %s3038_s27 }
 0x11b   :  { %855 = vrot.lane.b32.xlu1 %v3225_v33, %s3037_s26 }
 0x175   :  { %v576_v35 = vpop.permute.xlu1 %575  ;;  %v564_v36 = vpop.permute.xlu0 %563 }
 0x176   :  { %v597_v42 = vcombine.low %v564_v36, %v576_v35  ;;  %v598_v43 = vcombine.high %v564_v36, %v576_v35 }
 0x178   :  { %v605_v49 = vrot.slane %v597_v42, %v3231_v41  ;;  %v612_v50 = vrot.slane %v598_v43, %v3231_v41 }
 0x179   :  { %v272_v44 = vpop.permute.xlu1 %271  ;;  %v570_v45 = vpop.permute.xlu0 %569 }
 0x17a   :  { %v581_v46 = vcombine.low %v199_v16, %v570_v45  ;;  %v582_v47 = vcombine.high %v199_v16, %v570_v45 }
 0x17c   :  { %v589_v51 = vrot.slane %v581_v46, %v3231_v41  ;;  %v596_v52 = vrot.slane %v582_v47, %v3231_v41 }
 0x17d   :  { %v284_v53 = vpop.permute.xlu1 %283  ;;  %v278_v54 = vpop.permute.xlu0 %277 }
 0x17e   :  { %v613_v55 = vcombine.low %v589_v51, %v605_v49  ;;  %v614_v56 = vcombine.high %v589_v51, %v605_v49  ;;  %v629_v57 = vcombine.low %v596_v52, %v612_v50  ;;  %v630_v58 = vcombine.high %v596_v52, %v612_v50 }
 0x17f   :  { %v305_v59 = vcombine.low %v272_v44, %v284_v53  ;;  %v306_v60 = vcombine.high %v272_v44, %v284_v53  ;;  %v289_v61 = vcombine.low %v135_v21, %v278_v54  ;;  %v290_v62 = vcombine.high %v135_v21, %v278_v54 }
 0x180   :  { %v621_v63 = vrot.slane %v613_v55, %v3233_v48  ;;  %v628_v1 = vrot.slane %v614_v56, %v3233_v48  ;;  %v637_v2 = vrot.slane %v629_v57, %v3233_v48  ;;  %v644_v3 = vrot.slane %v630_v58, %v3233_v48 }
 0x181   :  { %v313_v4 = vrot.slane %v305_v59, %v3231_v41  ;;  %v320_v5 = vrot.slane %v306_v60, %v3231_v41  ;;  %v297_v6 = vrot.slane %v289_v61, %v3231_v41  ;;  %v304_v7 = vrot.slane %v290_v62, %v3231_v41  ;;  %v572_v8 = vpop.permute.xlu1 %571  ;;  %v566_v9 = vpop.permute.xlu0 %565 }
 0x182   :  { %v717_v14 = vcombine.low %v621_v63, %v628_v1  ;;  %v2643_v15 = vcombine.high %v621_v63, %v628_v1  ;;  %v733_v16 = vcombine.low %v637_v2, %v644_v3  ;;  %v2644_v17 = vcombine.high %v637_v2, %v644_v3 }
 0x183   :  { %v321_v10 = vcombine.low %v297_v6, %v313_v4  ;;  %v322_v11 = vcombine.high %v297_v6, %v313_v4  ;;  %v337_v12 = vcombine.low %v304_v7, %v320_v5  ;;  %v338_v13 = vcombine.high %v304_v7, %v320_v5 }
 0x184   :  { %v649_v26 = vcombine.low %v3206_v22, %v572_v8  ;;  %v650_v27 = vcombine.high %v3206_v22, %v572_v8  ;;  %v724_v46 = vrot.slane %v717_v14, %v3231_v41  ;;  %v732_v47 = vrot.slane %v2643_v15, %v3231_v41 }
 0x185   :  { %v329_v18 = vrot.slane %v321_v10, %v3233_v48  ;;  %v336_v19 = vrot.slane %v322_v11, %v3233_v48  ;;  %v345_v20 = vrot.slane %v337_v12, %v3233_v48  ;;  %v352_v21 = vrot.slane %v338_v13, %v3233_v48  ;;  %v274_v24 = vpop.permute.xlu1 %273  ;;  %v578_v25 = vpop.permute.xlu0 %577 }
 0x186   :  { %v665_v28 = vcombine.low %v566_v9, %v578_v25  ;;  %v666_v29 = vcombine.high %v566_v9, %v578_v25  ;;  %v657_v35 = vrot.slane %v649_v26, %v3231_v41  ;;  %v664_v36 = vrot.slane %v650_v27, %v3231_v41 }
 0x187   :  { %v425_v30 = vcombine.low %v329_v18, %v336_v19  ;;  %v2639_v31 = vcombine.high %v329_v18, %v336_v19  ;;  %v441_v32 = vcombine.low %v345_v20, %v352_v21  ;;  %v2640_v34 = vcombine.high %v345_v20, %v352_v21 }
 0x188   :  { %v673_v37 = vrot.slane %v665_v28, %v3231_v41  ;;  %v680_v38 = vrot.slane %v666_v29, %v3231_v41  ;;  %v740_v49 = vrot.slane %v733_v16, %v3231_v41  ;;  %v748_v50 = vrot.slane %v2644_v17, %v3231_v41 }
 0x189   :  { %v286_v45 = vpop.permute.xlu1 %285  ;;  %v280_v22 = vpop.permute.xlu0 %279  ;;  %v3262_v51 = vrot.slane %v425_v30, %v3231_v41  ;;  %v3265_v52 = vrot.slane %v2639_v31, %v3231_v41  ;;  %v3268_v53 = vrot.slane %v441_v32, %v3231_v41  ;;  %v3271_v54 = vrot.slane %v2640_v34, %v3231_v41 }
 0x18a   :  { %v681_v40 = vcombine.low %v657_v35, %v673_v37  ;;  %v682_v42 = vcombine.high %v657_v35, %v673_v37  ;;  %v697_v43 = vcombine.low %v664_v36, %v680_v38  ;;  %v698_v44 = vcombine.high %v664_v36, %v680_v38 }
 0x18b   :  { %v373_v55 = vcombine.low %v274_v24, %v286_v45  ;;  %v374_v56 = vcombine.high %v274_v24, %v286_v45  ;;  %v357_v57 = vcombine.low %v3212_v23, %v280_v22  ;;  %v358_v58 = vcombine.high %v3212_v23, %v280_v22 }
 0x18c   :  { %v689_v59 = vrot.slane %v681_v40, %v3233_v48  ;;  %v696_v60 = vrot.slane %v682_v42, %v3233_v48  ;;  %v705_v61 = vrot.slane %v697_v43, %v3233_v48  ;;  %v712_v62 = vrot.slane %v698_v44, %v3233_v48 }
 0x18d   :  { %v381_v63 = vrot.slane %v373_v55, %v3231_v41  ;;  %v388_v1 = vrot.slane %v374_v56, %v3231_v41  ;;  %v365_v2 = vrot.slane %v357_v57, %v3231_v41  ;;  %v372_v3 = vrot.slane %v358_v58, %v3231_v41 }
 0x18e   :  { %v457_v23 = vcombine.low %v3262_v51, %v3265_v52  ;;  %v473_v4 = vcombine.low %v3268_v53, %v3271_v54  ;;  %v785_v7 = vcombine.low %v689_v59, %v696_v60  ;;  %v2645_v8 = vcombine.high %v689_v59, %v696_v60 }
 0x18f   :  { %v389_v5 = vcombine.low %v365_v2, %v381_v63  ;;  %v390_v6 = vcombine.high %v365_v2, %v381_v63  ;;  %v749_v9 = vcombine.low %v724_v46, %v732_v47  ;;  %v765_v10 = vcombine.low %v740_v49, %v748_v50 }
 0x190   :  { %v801_v11 = vcombine.low %v705_v61, %v712_v62  ;;  %v2646_v12 = vcombine.high %v705_v61, %v712_v62  ;;  %v405_v13 = vcombine.low %v372_v3, %v388_v1  ;;  %v406_v14 = vcombine.high %v372_v3, %v388_v1 }
 0x191   :  { %v458_v15 = vcombine.high %v3262_v51, %v3265_v52  ;;  %v474_v16 = vcombine.high %v3268_v53, %v3271_v54  ;;  %v757_v17 = vrot.slane %v749_v9, %v3233_v48  ;;  %v773_v18 = vrot.slane %v765_v10, %v3233_v48 }
 0x192   :  { %v397_v19 = vrot.slane %v389_v5, %v3233_v48  ;;  %v404_v20 = vrot.slane %v390_v6, %v3233_v48  ;;  %v465_v21 = vrot.slane %v457_v23, %v3233_v48  ;;  %v481_v24 = vrot.slane %v473_v4, %v3233_v48 }
 0x193   :  { %v3298_v25 = vrot.slane %v785_v7, %v3231_v41  ;;  %v800_v26 = vrot.slane %v2645_v8, %v3231_v41  ;;  %v781_v27 = vcombine.low %v757_v17, %v773_v18  ;;  %v782_v28 = vcombine.high %v757_v17, %v773_v18 }
 0x194   :  { %v808_v29 = vrot.slane %v801_v11, %v3231_v41  ;;  %v816_v30 = vrot.slane %v2646_v12, %v3231_v41  ;;  %v413_v31 = vrot.slane %v405_v13, %v3233_v48  ;;  %v420_v32 = vrot.slane %v406_v14, %v3233_v48 }
 0x195   :  { %v1153_v34 = vpack.c.bf16 %v781_v27, %v781_v27  ;;  %v1154_v35 = vpack.c.bf16 %v782_v28, %v782_v28  ;;  %v750_v36 = vcombine.high %v724_v46, %v732_v47  ;;  %v766_v37 = vcombine.high %v740_v49, %v748_v50 }
 0x196   :  { %v493_v38 = vcombine.low %v397_v19, %v404_v20  ;;  %v2641_v40 = vcombine.high %v397_v19, %v404_v20  ;;  %v489_v42 = vcombine.low %v465_v21, %v481_v24  ;;  %v490_v43 = vcombine.high %v465_v21, %v481_v24 }
 0x197   :  { %v1167_v44 = vsel %vm1162_vm2, %v1153_v34, 0  ;;  %v1213_v45 = vsel %vm1162_vm2, %v1154_v35, 0  ;;  %v764_v22 = vrot.slane %v750_v36, %v3233_v48  ;;  %v780_v51 = vrot.slane %v766_v37, %v3233_v48 }
 0x198   :  { %v509_v52 = vcombine.low %v413_v31, %v420_v32  ;;  %v2642_v53 = vcombine.high %v413_v31, %v420_v32  ;;  %2766 = vmatpush3.bf16.xpose.msra.mxu1 %v1167_v44  ;;  %2772 = vmatpush3.bf16.xpose.msra.mxu0 %v1213_v45  ;;  %v817_v54 = vcombine.low %v3298_v25, %v800_v26  ;;  %v1161_v45 = vld [vmem:[#allocation2] sm:$0xff] }
 0x199   :  { %2777 = vmatprep.subr.bf16.mxu1 %v3034_v0  ;;  %2783 = vmatprep.subr.bf16.mxu0 %v3034_v0  ;;  %v783_v46 = vcombine.low %v764_v22, %v780_v51  ;;  %v784_v47 = vcombine.high %v764_v22, %v780_v51  ;;  %v833_v49 = vcombine.low %v808_v29, %v816_v30 }
 0x19a   :  { %v825_v56 = vrot.slane %v817_v54, %v3233_v48  ;;  %v500_v58 = vrot.slane %v493_v38, %v3231_v41  ;;  %v508_v59 = vrot.slane %v2641_v40, %v3231_v41  ;;  %v1145_v60 = vpack.c.bf16 %v489_v42, %v489_v42 }
 0x19b   :  { %v1155_v50 = vpack.c.bf16 %v783_v46, %v783_v46  ;;  %v1156_v55 = vpack.c.bf16 %v784_v47, %v784_v47  ;;  %v841_v57 = vrot.slane %v833_v49, %v3233_v48  ;;  %v1146_v61 = vpack.c.bf16 %v490_v43, %v490_v43 }
 0x19c   :  { %v516_v62 = vrot.slane %v509_v52, %v3231_v41  ;;  %v524_v63 = vrot.slane %v2642_v53, %v3231_v41  ;;  %v472_v1 = vrot.slane %v458_v15, %v3233_v48  ;;  %v488_v2 = vrot.slane %v474_v16, %v3233_v48 }
 0x19d   :  { %v818_v3 = vcombine.high %v3298_v25, %v800_v26  ;;  %v834_v23 = vcombine.high %v808_v29, %v816_v30  ;;  %v1259_v4 = vsel %vm1162_vm2, %v1155_v50, 0  ;;  %v1305_v5 = vsel %vm1162_vm2, %v1156_v55, 0 }
 0x19e   :  { %v849_v6 = vcombine.low %v825_v56, %v841_v57  ;;  %v850_v7 = vcombine.high %v825_v56, %v841_v57  ;;  %v525_v8 = vcombine.low %v500_v58, %v508_v59  ;;  %v541_v9 = vcombine.low %v516_v62, %v524_v63 }
 0x19f   :  { %2768 = vmatmul.mubr.msk.bf16.vlgmr.msra.gmra.mrb[12].mxu1 %vm1162_vm2, %v1145_v60  ;;  %2774 = vmatmul.mubr.msk.bf16.vlgmr.msra.gmra.mrb[0].mxu0 %vm1162_vm2, %v1146_v61  ;;  %v491_v10 = vcombine.low %v472_v1, %v488_v2  ;;  %v492_v11 = vcombine.high %v472_v1, %v488_v2  ;;  %v832_v14 = vrot.slane %v818_v3, %v3233_v48 }
 0x1a0   :  { %2778 = vmatpush3.bf16.xpose.msra.mxu1 %v1259_v4  ;;  %2784 = vmatpush3.bf16.xpose.msra.mxu0 %v1305_v5  ;;  %v1157_v12 = vpack.c.bf16 %v849_v6, %v849_v6  ;;  %v1158_v13 = vpack.c.bf16 %v850_v7, %v850_v7  ;;  %v848_v15 = vrot.slane %v834_v23, %v3233_v48 }
 0x1a1   :  { %2779 = vmatprep.mubr.msk.bf16.mxu1 %vm3035_vm0, %v3034_v0  ;;  %2785 = vmatprep.mubr.msk.bf16.mxu0 %vm3035_vm0, %v3034_v0  ;;  %v1147_v16 = vpack.c.bf16 %v491_v10, %v491_v10  ;;  %v1148_v17 = vpack.c.bf16 %v492_v11, %v492_v11  ;;  %v533_v18 = vrot.slane %v525_v8, %v3233_v48 }
 0x1a2   :  { %2789 = vmatprep.subr.bf16.mxu1 %v3034_v0  ;;  %2795 = vmatprep.subr.bf16.mxu0 %v3034_v0  ;;  %v549_v19 = vrot.slane %v541_v9, %v3233_v48  ;;  %v1351_v20 = vsel %vm1162_vm2, %v1157_v12, 0  ;;  %v1397_v21 = vsel %vm1162_vm2, %v1158_v13, 0  ;;  %v851_v24 = vcombine.low %v832_v14, %v848_v15 }
 0x1a3   :  { %v852_v25 = vcombine.high %v832_v14, %v848_v15  ;;  %v526_v26 = vcombine.high %v500_v58, %v508_v59  ;;  %v542_v27 = vcombine.high %v516_v62, %v524_v63 }
 0x1a4   :  { %v557_v28 = vcombine.low %v533_v18, %v549_v19  ;;  %v558_v29 = vcombine.high %v533_v18, %v549_v19  ;;  %v1159_v30 = vpack.c.bf16 %v851_v24, %v851_v24 }
 0x1a5   :  { %v1160_v31 = vpack.c.bf16 %v852_v25, %v852_v25  ;;  %v540_v35 = vrot.slane %v526_v26, %v3233_v48  ;;  %v556_v36 = vrot.slane %v542_v27, %v3233_v48 }
 0x1a6   :  { %v1149_v32 = vpack.c.bf16 %v557_v28, %v557_v28  ;;  %v1150_v34 = vpack.c.bf16 %v558_v29, %v558_v29  ;;  %v1443_v37 = vsel %vm1162_vm2, %v1159_v30, 0 }
 0x1a7   :  { %2780 = vmatmul.mubr.msk.bf16.vlgmr.msra.gmra.mrb[16].mxu1 %vm1162_vm2, %v1147_v16  ;;  %2786 = vmatmul.mubr.msk.bf16.vlgmr.msra.gmra.mrb[4].mxu0 %vm1162_vm2, %v1148_v17  ;;  %v1489_v38 = vsel %vm1162_vm2, %v1160_v31, 0  ;;  %v559_v40 = vcombine.low %v540_v35, %v556_v36  ;;  %v560_v42 = vcombine.high %v540_v35, %v556_v36 }
 0x1a8   :  { %2790 = vmatpush3.bf16.xpose.msra.mxu1 %v1351_v20  ;;  %2796 = vmatpush3.bf16.xpose.msra.mxu0 %v1397_v21 }
 0x1a9   :  { %2791 = vmatprep.mubr.msk.bf16.mxu1 %vm3035_vm0, %v3034_v0  ;;  %2797 = vmatprep.mubr.msk.bf16.mxu0 %vm3035_vm0, %v3034_v0  ;;  %v1151_v43 = vpack.c.bf16 %v559_v40, %v559_v40  ;;  %v1152_v44 = vpack.c.bf16 %v560_v42, %v560_v42 }
 0x1aa   :  { %2801 = vmatprep.subr.bf16.mxu1 %v3034_v0  ;;  %2807 = vmatprep.subr.bf16.mxu0 %v3034_v0 }
 0x1af   :  { %2792 = vmatmul.mubr.msk.bf16.vlgmr.msra.gmra.mrb[20].mxu1 %vm1162_vm2, %v1149_v32  ;;  %2798 = vmatmul.mubr.msk.bf16.vlgmr.msra.gmra.mrb[8].mxu0 %vm1162_vm2, %v1150_v34  ;;  %v856_v32 = vpop.permute.xlu1 %855 }
 0x1b0   :  { %2802 = vmatpush3.bf16.xpose.msra.mxu1 %v1443_v37  ;;  %2808 = vmatpush3.bf16.xpose.msra.mxu0 %v1489_v38 }
 0x1b1   :  { %2803 = vmatprep.mubr.msk.bf16.mxu1 %vm3035_vm0, %v3034_v0  ;;  %2809 = vmatprep.mubr.msk.bf16.mxu0 %vm3035_vm0, %v3034_v0 }
 0x1b2   :  { %2813 = vmatprep.subr.bf16.mxu1 %v3034_v0  ;;  %2819 = vmatprep.subr.bf16.mxu0 %v3034_v0 }
 0x1b7   :  { %2804 = vmatmul.mubr.msk.bf16.vlgmr.msra.gmra.mrb[24].mxu1 %vm1162_vm2, %v1151_v43  ;;  %2810 = vmatmul.mubr.msk.bf16.vlgmr.msra.gmra.mrb[12].mxu0 %vm1162_vm2, %v1152_v44 }
 0x1b8   :  { %2815 = vmatprep.mubr.msk.bf16.mxu1 %vm3035_vm0, %v3034_v0  ;;  %2821 = vmatprep.mubr.msk.bf16.mxu0 %vm3035_vm0, %v3034_v0 }
 0x272   :  { %v1203_v22 = vpop.f32.mrb[12].mxu1  ;;  %v1249_v51 = vpop.f32.mrb[0].mxu0 }
 0x273   :  { %v1204_v52 = vadd.f32 %v1203_v22, %v1161_v45  ;;  %v1250_v53 = vadd.f32 %v1249_v51, %v1161_v45  ;;  %v2769_v54 = vpop.f32.mrb[13].mxu1  ;;  %v2775_v46 = vpop.f32.mrb[1].mxu0 }
 0x274   :  { %v1206_v47 = vpop.f32.mrb[14].mxu1  ;;  %v1252_v49 = vpop.f32.mrb[2].mxu0 }
 0x275   :  { %v2770_v50 = vpop.f32.mrb[15].mxu1  ;;  %v2776_v55 = vpop.f32.mrb[3].mxu0  ;;  %v1534_v56 = vsel %vm1162_vm2, %v1250_v53, -inf  ;;  %v1531_v57 = vsel %vm1162_vm2, %v1204_v52, -inf }
 0x276   :  { %1535 = vmax.xlane.f32.xlu1 %v1534_v56  ;;  %1532 = vmax.xlane.f32.xlu0 %v1531_v57 }
 0x27a   :  { %v1295_v58 = vpop.f32.mrb[16].mxu1  ;;  %v1341_v59 = vpop.f32.mrb[4].mxu0 }
 0x27b   :  { %v1296_v60 = vadd.f32 %v1295_v58, %v1161_v45  ;;  %v2781_v61 = vpop.f32.mrb[17].mxu1  ;;  %v2787_v62 = vpop.f32.mrb[5].mxu0  ;;  %v1342_v2 = vadd.f32 %v1341_v59, %v1161_v45 }
 0x27c   :  { %v1298_v63 = vpop.f32.mrb[18].mxu1  ;;  %v1344_v1 = vpop.f32.mrb[6].mxu0 }
 0x27d   :  { %v2782_v3 = vpop.f32.mrb[19].mxu1  ;;  %v2788_v23 = vpop.f32.mrb[7].mxu0  ;;  %v1537_v4 = vsel %vm1162_vm2, %v1296_v60, -inf  ;;  %v1540_v5 = vsel %vm1162_vm2, %v1342_v2, -inf }
 0x27e   :  { %1538 = vmax.xlane.f32.xlu0 %v1537_v4 }
 0x282   :  { %v1433_v6 = vpop.f32.mrb[8].mxu0  ;;  %1541 = vmax.xlane.f32.xlu0 %v1540_v5  ;;  %v1387_v7 = vpop.f32.mrb[20].mxu1 }
 0x283   :  { %v3367_v8 = vadd.f32 %v1433_v6, %v1161_v45  ;;  %v1388_v9 = vadd.f32 %v1387_v7, %v1161_v45  ;;  %v2793_v10 = vpop.f32.mrb[21].mxu1  ;;  %v2799_v11 = vpop.f32.mrb[9].mxu0 }
 0x284   :  { %v1390_v12 = vpop.f32.mrb[22].mxu1  ;;  %v1436_v13 = vpop.f32.mrb[10].mxu0 }
 0x285   :  { %v2794_v14 = vpop.f32.mrb[23].mxu1  ;;  %v2800_v15 = vpop.f32.mrb[11].mxu0  ;;  %v1546_v16 = vsel %vm1162_vm2, %v3367_v8, -inf  ;;  %v1543_v17 = vsel %vm1162_vm2, %v1388_v9, -inf }
 0x286   :  { %1547 = vmax.xlane.f32.xlu0 %v1546_v16  ;;  %1544 = vmax.xlane.f32.xlu1 %v1543_v17 }
 0x28a   :  { %v1479_v18 = vpop.f32.mrb[24].mxu1  ;;  %v1525_v19 = vpop.f32.mrb[12].mxu0 }
 0x28b   :  { %v3372_v20 = vadd.f32 %v1479_v18, %v1161_v45  ;;  %v3374_v21 = vadd.f32 %v1525_v19, %v1161_v45  ;;  %v2805_v24 = vpop.f32.mrb[25].mxu1  ;;  %v2811_v25 = vpop.f32.mrb[13].mxu0 }
 0x28c   :  { %v1482_v26 = vpop.f32.mrb[26].mxu1  ;;  %v1528_v27 = vpop.f32.mrb[14].mxu0 }
 0x28d   :  { %v2806_v28 = vpop.f32.mrb[27].mxu1  ;;  %v2812_v29 = vpop.f32.mrb[15].mxu0  ;;  %v1552_v30 = vsel %vm1162_vm2, %v3374_v21, -inf  ;;  %v1549_v31 = vsel %vm1162_vm2, %v3372_v20, -inf }
 0x28e   :  { %1553 = vmax.xlane.f32.xlu0 %v1552_v30  ;;  %1550 = vmax.xlane.f32.xlu1 %v1549_v31 }
 0x29f   :  { %867 = vrot.lane.b32.xlu1 %v3225_v33, %s3036_s25 }
 0x2a4   :  { %861 = vrot.lane.b32.xlu0 %v3225_v33, %s3038_s27 }
 0x303   :  { %v1536_v34 = vpop.xlane.xlu1 %1535  ;;  %v1533_v35 = vpop.xlane.xlu0 %1532 }
 0x304   :  { %v1556_v36 = vsub.f32 %v1250_v53, %v1536_v34  ;;  %v1555_v37 = vsub.f32 %v1204_v52, %v1533_v35 }
 0x306   :  { %v1565_v38 = vmul.f32 1.442695, %v1556_v36  ;;  %v1563_v40 = vmul.f32 1.442695, %v1555_v37 }
 0x308   :  { %2919 = vpow2.f32 %v1565_v38 }
 0x309   :  { %2921 = vpow2.f32 %v1563_v40 }
 0x30b   :  { %v1539_v42 = vpop.xlane.xlu0 %1538 }
 0x30c   :  { %v1557_v43 = vsub.f32 %v1296_v60, %v1539_v42 }
 0x30e   :  { %v1567_v44 = vmul.f32 1.442695, %v1557_v43 }
 0x30f   :  { %v1542_v45 = vpop.xlane.xlu0 %1541 }
 0x310   :  { %2923 = vpow2.f32 %v1567_v44  ;;  %v1558_v22 = vsub.f32 %v1342_v2, %v1542_v45 }
 0x312   :  { %v3384_v51 = vpop.eup %2919  ;;  %v1569_v54 = vmul.f32 1.442695, %v1558_v22 }
 0x313   :  { %v3386_v46 = vpop.eup %2921  ;;  %v1545_v47 = vpop.xlane.xlu1 %1544  ;;  %v1582_v53 = vsel %vm1162_vm2, %v3384_v51, 0.0 }
 0x314   :  { %2925 = vpow2.f32 %v1569_v54  ;;  %v1559_v52 = vsub.f32 %v1388_v9, %v1545_v47  ;;  %1583 = vadd.xlane.f32.xlu0 %v1582_v53  ;;  %v1579_v49 = vsel %vm1162_vm2, %v3386_v46, 0.0  ;;  %v3392_v55 = vpop.xlane.xlu0 %1547 }
 0x315   :  { %1580 = vadd.xlane.f32.xlu1 %v1579_v49  ;;  %v1560_v53 = vsub.f32 %v3367_v8, %v3392_v55 }
 0x316   :  { %v1571_v50 = vmul.f32 1.442695, %v1559_v52 }
 0x317   :  { %v1573_v52 = vmul.f32 1.442695, %v1560_v53 }
 0x318   :  { %2927 = vpow2.f32 %v1571_v50 }
 0x319   :  { %2929 = vpow2.f32 %v1573_v52 }
 0x31a   :  { %v3394_v56 = vpop.eup %2923 }
 0x31b   :  { %v3396_v57 = vpop.xlane.xlu0 %1553  ;;  %v1551_v58 = vpop.xlane.xlu1 %1550  ;;  %v1585_v59 = vsel %vm1162_vm2, %v3394_v56, 0.0 }
 0x31c   :  { %1586 = vadd.xlane.f32.xlu1 %v1585_v59  ;;  %v1561_v49 = vsub.f32 %v3372_v20, %v1551_v58  ;;  %v1562_v20 = vsub.f32 %v3374_v21, %v3396_v57 }
 0x31e   :  { %v3400_v60 = vpop.eup %2925  ;;  %v1575_v50 = vmul.f32 1.442695, %v1561_v49  ;;  %v1577_v55 = vmul.f32 1.442695, %v1562_v20 }
 0x31f   :  { %v862_v61 = vpop.permute.xlu0 %861  ;;  %v868_v62 = vpop.permute.xlu1 %867  ;;  %v1588_v63 = vsel %vm1162_vm2, %v3400_v60, 0.0 }
 0x320   :  { %v873_v1 = vcombine.low %v3225_v33, %v862_v61  ;;  %v874_v2 = vcombine.high %v3225_v33, %v862_v61  ;;  %v889_v3 = vcombine.low %v856_v32, %v868_v62  ;;  %1589 = vadd.xlane.f32.xlu0 %v1588_v63  ;;  %v890_v23 = vcombine.high %v856_v32, %v868_v62 }
 0x321   :  { %2931 = vpow2.f32 %v1575_v50 }
 0x322   :  { %v881_v4 = vrot.slane %v873_v1, %v3231_v41  ;;  %v888_v5 = vrot.slane %v874_v2, %v3231_v41  ;;  %v897_v6 = vrot.slane %v889_v3, %v3231_v41  ;;  %v3409_v7 = vpop.eup %2927  ;;  %v904_v9 = vrot.slane %v890_v23, %v3231_v41 }
 0x323   :  { %v1591_v12 = vsel %vm1162_vm2, %v3409_v7, 0.0  ;;  %v3437_v59 = vpop.eup %2929  ;;  %2933 = vpow2.f32 %v1577_v55 }
 0x324   :  { %v905_v10 = vcombine.low %v881_v4, %v897_v6  ;;  %v906_v11 = vcombine.high %v881_v4, %v897_v6  ;;  %v921_v13 = vcombine.low %v888_v5, %v904_v9  ;;  %v922_v33 = vcombine.high %v888_v5, %v904_v9  ;;  %1592 = vadd.xlane.f32.xlu0 %v1591_v12 }
 0x325   :  { %v1594_v61 = vsel %vm1162_vm2, %v3437_v59, 0.0 }
 0x326   :  { %v913_v14 = vrot.slane %v905_v10, %v3233_v48  ;;  %v920_v15 = vrot.slane %v906_v11, %v3233_v48  ;;  %v929_v16 = vrot.slane %v921_v13, %v3233_v48  ;;  %v936_v17 = vrot.slane %v922_v33, %v3233_v48 }
 0x328   :  { %v1009_v18 = vcombine.low %v913_v14, %v920_v15  ;;  %v2647_v19 = vcombine.high %v913_v14, %v920_v15  ;;  %v1025_v24 = vcombine.low %v929_v16, %v936_v17  ;;  %v2648_v25 = vcombine.high %v929_v16, %v936_v17 }
 0x32a   :  { %v1016_v26 = vrot.slane %v1009_v18, %v3231_v41  ;;  %v1024_v27 = vrot.slane %v2647_v19, %v3231_v41  ;;  %v1032_v28 = vrot.slane %v1025_v24, %v3231_v41  ;;  %v1040_v29 = vrot.slane %v2648_v25, %v3231_v41 }
 0x32b   :  { %v3441_v62 = vpop.eup %2931 }
 0x32c   :  { %v1041_v30 = vcombine.low %v1016_v26, %v1024_v27  ;;  %v1042_v31 = vcombine.high %v1016_v26, %v1024_v27  ;;  %v1057_v32 = vcombine.low %v1032_v28, %v1040_v29  ;;  %v1058_v34 = vcombine.high %v1032_v28, %v1040_v29 }
 0x32d   :  { %863 = vrot.lane.b32.xlu1 %v3229_v39, %s3038_s27  ;;  %v1597_v8 = vsel %vm1162_vm2, %v3441_v62, 0.0  ;;  %v3449_v58 = vpop.eup %2933 }
 0x32e   :  { %v1049_v35 = vrot.slane %v1041_v30, %v3233_v48  ;;  %v1056_v36 = vrot.slane %v1042_v31, %v3233_v48  ;;  %v1065_v37 = vrot.slane %v1057_v32, %v3233_v48  ;;  %v1072_v38 = vrot.slane %v1058_v34, %v3233_v48 }
 0x32f   :  { %v1600_v63 = vsel %vm1162_vm2, %v3449_v58, 0.0 }
 0x330   :  { %v1073_v40 = vcombine.low %v1049_v35, %v1065_v37  ;;  %v1074_v42 = vcombine.high %v1049_v35, %v1065_v37  ;;  %v1075_v43 = vcombine.low %v1056_v36, %v1072_v38  ;;  %v1076_v44 = vcombine.high %v1056_v36, %v1072_v38 }
 0x332   :  { %v1635_v45 = vpack.c.bf16 %v1073_v40, %v1073_v40  ;;  %v1636_v22 = vpack.c.bf16 %v1074_v42, %v1074_v42  ;;  %v1638_v21 = vpack.c.bf16 %v1076_v44, %v1076_v44  ;;  %v1637_v9 = vpack.c.bf16 %v1075_v43, %v1075_v43 }
 0x334   :  { %v1648_v54 = vsel %vm1646_vm3, %v1635_v45, 0  ;;  %v1694_v47 = vsel %vm1646_vm3, %v1636_v22, 0  ;;  %v1786_v12 = vsel %vm1646_vm3, %v1638_v21, 0 }
 0x335   :  { %2814 = vmatpush3.bf16.msra.mxu1 %v1648_v54  ;;  %2820 = vmatpush3.bf16.msra.mxu0 %v1694_v47 }
 0x336   :  { %2825 = vmatprep.subr.bf16.mxu1 %v3034_v0  ;;  %2831 = vmatprep.subr.bf16.mxu0 %v3034_v0 }
 0x33a   :  { %857 = vrot.lane.b32.xlu0 %v3229_v39, %s3037_s26 }
 0x351   :  { %1595 = vadd.xlane.f32.xlu1 %v1594_v61 }
 0x359   :  { %1598 = vadd.xlane.f32.xlu0 %v1597_v8 }
 0x362   :  { %869 = vrot.lane.b32.xlu1 %v3229_v39, %s3036_s25 }
 0x386   :  { %1601 = vadd.xlane.f32.xlu1 %v1600_v63 }
 0x3a1   :  { %v1584_v1 = vpop.xlane.xlu0 %1583 }
 0x3a2   :  { %2935 = vrcp.f32 %v1584_v1  ;;  %v1581_v2 = vpop.xlane.xlu1 %1580 }
 0x3a3   :  { %2937 = vrcp.f32 %v1581_v2 }
 0x3a9   :  { %v1587_v3 = vpop.xlane.xlu1 %1586 }
 0x3aa   :  { %2939 = vrcp.f32 %v1587_v3 }
 0x3ac   :  { %v2936_v23 = vpop.eup %2935 }
 0x3ad   :  { %v2938_v4 = vpop.eup %2937  ;;  %v1606_v5 = vmul.f32 %v2936_v23, %v3384_v51  ;;  %v1590_v6 = vpop.xlane.xlu0 %1589  ;;  %v1740_v51 = vsel %vm1646_vm3, %v1637_v9, 0 }
 0x3ae   :  { %v1604_v57 = vmul.f32 %v2938_v4, %v3386_v46  ;;  %2941 = vrcp.f32 %v1590_v6 }
 0x3af   :  { %1620 = vst.msk [vmem:[#allocation6 + $0x8] sm:$0xff] %vm1162_vm2, %v1606_v5  ;;  %v1628_v10 = vpack.c.bf16 %v1606_v5, %v1606_v5 }
 0x3b0   :  { %1619 = vst.msk [vmem:[#allocation6] sm:$0xff] %vm1162_vm2, %v1604_v57  ;;  %v1627_v11 = vpack.c.bf16 %v1604_v57, %v1604_v57 }
 0x3b1   :  { %2822 = vmatmul.mubr.msk.bf16.vlgmr.msra.gmra.mrb[16].mxu0 %vm1162_vm2, %v1628_v10  ;;  %v1593_v13 = vpop.xlane.xlu0 %1592 }
 0x3b2   :  { %2816 = vmatmul.mubr.msk.bf16.vlgmr.msra.gmra.mrb[28].mxu1 %vm1162_vm2, %v1627_v11  ;;  %2832 = vmatpush3.bf16.msra.mxu0 %v1786_v12  ;;  %2943 = vrcp.f32 %v1593_v13 }
 0x3b3   :  { %2826 = vmatpush3.bf16.msra.mxu1 %v1740_v51  ;;  %2827 = vmatprep.mubr.msk.bf16.mxu1 %vm3035_vm0, %v3034_v0 }
 0x3b4   :  { %v2940_v46 = vpop.eup %2939  ;;  %2833 = vmatprep.mubr.msk.bf16.mxu0 %vm3035_vm0, %v3034_v0  ;;  %2837 = vmatprep.subr.bf16.mxu1 %v3034_v0 }
 0x3b5   :  { %v1608_v33 = vmul.f32 %v2940_v46, %v3394_v56  ;;  %2843 = vmatprep.subr.bf16.mxu0 %v3034_v0  ;;  %v858_v26 = vpop.permute.xlu0 %857 }
 0x3b7   :  { %1621 = vst.msk [vmem:[#allocation6 + $0x10] sm:$0xff] %vm1162_vm2, %v1608_v33  ;;  %v1629_v14 = vpack.c.bf16 %v1608_v33, %v1608_v33 }
 0x3b8   :  { %v2942_v15 = vpop.eup %2941 }
 0x3b9   :  { %v1610_v16 = vmul.f32 %v2942_v15, %v3400_v60  ;;  %v864_v60 = vpop.permute.xlu1 %863 }
 0x3ba   :  { %2828 = vmatmul.mubr.msk.bf16.vlgmr.msra.gmra.mrb[32].mxu1 %vm1162_vm2, %v1629_v14  ;;  %v941_v24 = vcombine.low %v3229_v39, %v864_v60  ;;  %v942_v25 = vcombine.high %v3229_v39, %v864_v60 }
 0x3bb   :  { %1622 = vst.msk [vmem:[#allocation6 + $0x18] sm:$0xff] %vm1162_vm2, %v1610_v16  ;;  %v1630_v17 = vpack.c.bf16 %v1610_v16, %v1610_v16  ;;  %2839 = vmatprep.mubr.msk.bf16.mxu1 %vm3035_vm0, %v3034_v0 }
 0x3bc   :  { %v2944_v18 = vpop.eup %2943  ;;  %v956_v30 = vrot.slane %v942_v25, %v3231_v41 }
 0x3bd   :  { %2834 = vmatmul.mubr.msk.bf16.vlgmr.msra.gmra.mrb[20].mxu0 %vm1162_vm2, %v1630_v17  ;;  %v3476_v56 = vmul.f32 %v2944_v18, %v3409_v7  ;;  %v949_v7 = vrot.slane %v941_v24, %v3231_v41 }
 0x3be   :  { %2845 = vmatprep.mubr.msk.bf16.mxu0 %vm3035_vm0, %v3034_v0 }
 0x3bf   :  { %1623 = vst.msk [vmem:[#allocation6 + $0x20] sm:$0xff] %vm1162_vm2, %v3476_v56  ;;  %v1631_v46 = vpack.c.bf16 %v3476_v56, %v3476_v56 }
 0x3de   :  { %v1596_v19 = vpop.xlane.xlu1 %1595 }
 0x3df   :  { %2945 = vrcp.f32 %v1596_v19 }
 0x3e2   :  { %v870_v27 = vpop.permute.xlu1 %869 }
 0x3e3   :  { %v957_v28 = vcombine.low %v858_v26, %v870_v27  ;;  %v958_v29 = vcombine.high %v858_v26, %v870_v27 }
 0x3e5   :  { %v965_v31 = vrot.slane %v957_v28, %v3231_v41  ;;  %v972_v32 = vrot.slane %v958_v29, %v3231_v41 }
 0x3e6   :  { %v1599_v38 = vpop.xlane.xlu0 %1598 }
 0x3e7   :  { %v973_v34 = vcombine.low %v949_v7, %v965_v31  ;;  %v974_v35 = vcombine.high %v949_v7, %v965_v31  ;;  %v989_v36 = vcombine.low %v956_v30, %v972_v32  ;;  %v990_v37 = vcombine.high %v956_v30, %v972_v32 }
 0x3e8   :  { %2947 = vrcp.f32 %v1599_v38 }
 0x3e9   :  { %v2946_v40 = vpop.eup %2945  ;;  %v981_v39 = vrot.slane %v973_v34, %v3233_v48  ;;  %v988_v42 = vrot.slane %v974_v35, %v3233_v48  ;;  %v997_v43 = vrot.slane %v989_v36, %v3233_v48  ;;  %v1004_v44 = vrot.slane %v990_v37, %v3233_v48 }
 0x3ea   :  { %v1614_v45 = vmul.f32 %v2946_v40, %v3437_v59 }
 0x3eb   :  { %v1077_v22 = vcombine.low %v981_v39, %v988_v42  ;;  %v2649_v54 = vcombine.high %v981_v39, %v988_v42  ;;  %v1093_v47 = vcombine.low %v997_v43, %v1004_v44  ;;  %v2650_v53 = vcombine.high %v997_v43, %v1004_v44 }
 0x3ec   :  { %1624 = vst.msk [vmem:[#allocation6 + $0x28] sm:$0xff] %vm1162_vm2, %v1614_v45 }
 0x3ed   :  { %v1084_v52 = vrot.slane %v1077_v22, %v3231_v41  ;;  %v1092_v49 = vrot.slane %v2649_v54, %v3231_v41  ;;  %v1100_v50 = vrot.slane %v1093_v47, %v3231_v41  ;;  %v1108_v61 = vrot.slane %v2650_v53, %v3231_v41 }
 0x3ef   :  { %v1109_v8 = vcombine.low %v1084_v52, %v1092_v49  ;;  %v1125_v20 = vcombine.low %v1100_v50, %v1108_v61  ;;  %v1110_v55 = vcombine.high %v1084_v52, %v1092_v49  ;;  %v1126_v63 = vcombine.high %v1100_v50, %v1108_v61 }
 0x3f1   :  { %v1117_v59 = vrot.slane %v1109_v8, %v3233_v48  ;;  %v1133_v1 = vrot.slane %v1125_v20, %v3233_v48  ;;  %v1124_v2 = vrot.slane %v1110_v55, %v3233_v48  ;;  %v1140_v3 = vrot.slane %v1126_v63, %v3233_v48 }
 0x3f2   :  { %v2948_v23 = vpop.eup %2947 }
 0x3f3   :  { %v1616_v4 = vmul.f32 %v2948_v23, %v3441_v62  ;;  %v1141_v5 = vcombine.low %v1117_v59, %v1133_v1  ;;  %v1142_v6 = vcombine.high %v1117_v59, %v1133_v1  ;;  %v1143_v21 = vcombine.low %v1124_v2, %v1140_v3 }
 0x3f4   :  { %v1144_v57 = vcombine.high %v1124_v2, %v1140_v3  ;;  %v1632_v62 = vpack.c.bf16 %v1614_v45, %v1614_v45 }
 0x3f5   :  { %1625 = vst.msk [vmem:[#allocation6 + $0x30] sm:$0xff] %vm1162_vm2, %v1616_v4  ;;  %v1639_v9 = vpack.c.bf16 %v1141_v5, %v1141_v5  ;;  %v1640_v10 = vpack.c.bf16 %v1142_v6, %v1142_v6  ;;  %v1641_v13 = vpack.c.bf16 %v1143_v21, %v1143_v21  ;;  %v1633_v15 = vpack.c.bf16 %v1616_v4, %v1616_v4 }
 0x3f6   :  { %v1642_v51 = vpack.c.bf16 %v1144_v57, %v1144_v57 }
 0x3f7   :  { %v1832_v11 = vsel %vm1646_vm3, %v1639_v9, 0  ;;  %v1878_v12 = vsel %vm1646_vm3, %v1640_v10, 0  ;;  %v1924_v33 = vsel %vm1646_vm3, %v1641_v13, 0 }
 0x3f8   :  { %2838 = vmatpush3.bf16.msra.mxu1 %v1832_v11  ;;  %2844 = vmatpush3.bf16.msra.mxu0 %v1878_v12  ;;  %v1970_v14 = vsel %vm1646_vm3, %v1642_v51, 0 }
 0x3f9   :  { %2849 = vmatprep.subr.bf16.mxu1 %v3034_v0  ;;  %2855 = vmatprep.subr.bf16.mxu0 %v3034_v0 }
 0x3fb   :  { %2840 = vmatmul.mubr.msk.bf16.vlgmr.msra.gmra.mrb[36].mxu1 %vm1162_vm2, %v1631_v46  ;;  %2846 = vmatmul.mubr.msk.bf16.vlgmr.msra.gmra.mrb[24].mxu0 %vm1162_vm2, %v1632_v62 }
 0x3fc   :  { %2850 = vmatpush3.bf16.msra.mxu1 %v1924_v33  ;;  %2856 = vmatpush3.bf16.msra.mxu0 %v1970_v14 }
 0x3fd   :  { %2851 = vmatprep.mubr.msk.bf16.mxu1 %vm3035_vm0, %v3034_v0  ;;  %2857 = vmatprep.mubr.msk.bf16.mxu0 %vm3035_vm0, %v3034_v0 }
 0x3fe   :  { %2861 = vmatprep.subr.bf16.mxu1 %v3034_v0  ;;  %2869 = vmatprep.subr.bf16.mxu0 %v3034_v0 }
 0x403   :  { %2852 = vmatmul.mubr.msk.bf16.vlgmr.msra.gmra.mrb[40].mxu1 %vm1162_vm2, %v1633_v15 }
 0x404   :  { %2865 = vmatprep.mubr.msk.bf16.mxu1 %vm3035_vm0, %v3034_v0 }
 0x413   :  { %v1602_v16 = vpop.xlane.xlu1 %1601 }
 0x414   :  { %2949 = vrcp.f32 %v1602_v16 }
 0x41e   :  { %v2950_v17 = vpop.eup %2949 }
 0x41f   :  { %v1618_v18 = vmul.f32 %v2950_v17, %v3449_v58 }
 0x421   :  { %1626 = vst.msk [vmem:[#allocation6 + $0x38] sm:$0xff] %vm1162_vm2, %v1618_v18  ;;  %v1634_v56 = vpack.c.bf16 %v1618_v18, %v1618_v18 }
 0x423   :  { %2858 = vmatmul.mubr.msk.bf16.vlgmr.msra.gmra.mrb[28].mxu0 %vm1162_vm2, %v1634_v56 }
 0x424   :  { %2885 = vmatprep.mubr.msk.bf16.mxu0 %vm3035_vm0, %v3034_v0 }
 0x484   :  { %v1730_v60 = vpop.f32.mrb[16].mxu0 }
 0x485   :  { %v1684_v19 = vpop.f32.mrb[28].mxu1  ;;  %v2823_v24 = vpop.f32.mrb[17].mxu0 }
 0x486   :  { %v2817_v25 = vpop.f32.mrb[29].mxu1  ;;  %v1733_v26 = vpop.f32.mrb[18].mxu0 }
 0x487   :  { %v1687_v27 = vpop.f32.mrb[30].mxu1  ;;  %v2824_v28 = vpop.f32.mrb[19].mxu0 }
 0x488   :  { %v2818_v29 = vpop.f32.mrb[31].mxu1 }
 0x48d   :  { %v1776_v7 = vpop.f32.mrb[32].mxu1 }
 0x48e   :  { %v2012_v30 = vcombine.low %v1684_v19, %v1776_v7  ;;  %v2013_v31 = vcombine.high %v1684_v19, %v1776_v7  ;;  %v2829_v58 = vpop.f32.mrb[33].mxu1 }
 0x48f   :  { %v1779_v32 = vpop.f32.mrb[34].mxu1 }
 0x490   :  { %v2830_v34 = vpop.f32.mrb[35].mxu1  ;;  %v1822_v35 = vpop.f32.mrb[20].mxu0  ;;  %v2020_v39 = vrot.slane %v2012_v30, %v3231_v41  ;;  %v2027_v42 = vrot.slane %v2013_v31, %v3231_v41 }
 0x491   :  { %v2028_v36 = vcombine.low %v1730_v60, %v1822_v35  ;;  %v2029_v37 = vcombine.high %v1730_v60, %v1822_v35  ;;  %v2835_v38 = vpop.f32.mrb[21].mxu0 }
 0x492   :  { %v1825_v40 = vpop.f32.mrb[22].mxu0 }
 0x493   :  { %v2036_v43 = vrot.slane %v2028_v36, %v3231_v41  ;;  %v2043_v44 = vrot.slane %v2029_v37, %v3231_v41  ;;  %v2836_v45 = vpop.f32.mrb[23].mxu0 }
 0x495   :  { %v2044_v22 = vcombine.low %v2020_v39, %v2036_v43  ;;  %v2045_v54 = vcombine.high %v2020_v39, %v2036_v43  ;;  %v2060_v47 = vcombine.low %v2027_v42, %v2043_v44  ;;  %v2061_v53 = vcombine.high %v2027_v42, %v2043_v44 }
 0x497   :  { %v2052_v52 = vrot.slane %v2044_v22, %v3233_v48  ;;  %v2059_v49 = vrot.slane %v2045_v54, %v3233_v48  ;;  %v2068_v50 = vrot.slane %v2060_v47, %v3233_v48  ;;  %v2075_v61 = vrot.slane %v2061_v53, %v3233_v48 }
 0x499   :  { %v2148_v8 = vcombine.low %v2052_v52, %v2059_v49  ;;  %v2667_v20 = vcombine.high %v2052_v52, %v2059_v49  ;;  %v2164_v55 = vcombine.low %v2068_v50, %v2075_v61  ;;  %v2668_v63 = vcombine.high %v2068_v50, %v2075_v61 }
 0x49b   :  { %v2155_v59 = vrot.slane %v2148_v8, %v3231_v41  ;;  %v2163_v1 = vrot.slane %v2667_v20, %v3231_v41  ;;  %v2171_v2 = vrot.slane %v2164_v55, %v3231_v41  ;;  %v2179_v3 = vrot.slane %v2668_v63, %v3231_v41 }
 0x49d   :  { %v2180_v23 = vcombine.low %v2155_v59, %v2163_v1  ;;  %v2196_v4 = vcombine.low %v2171_v2, %v2179_v3  ;;  %v2181_v5 = vcombine.high %v2155_v59, %v2163_v1  ;;  %v2197_v6 = vcombine.high %v2171_v2, %v2179_v3 }
 0x49f   :  { %v3541_v21 = vrot.slane %v2180_v23, %v3233_v48  ;;  %v3544_v57 = vrot.slane %v2196_v4, %v3233_v48  ;;  %v2195_v9 = vrot.slane %v2181_v5, %v3233_v48  ;;  %v2211_v10 = vrot.slane %v2197_v6, %v3233_v48 }
 0x4a1   :  { %v2213_v11 = vcombine.high %v3541_v21, %v3544_v57  ;;  %v2214_v12 = vcombine.low %v2195_v9, %v2211_v10  ;;  %v2215_v13 = vcombine.high %v2195_v9, %v2211_v10  ;;  %v2212_v51 = vcombine.low %v3541_v21, %v3544_v57  ;;  %v2960_v57 = vld [vmem:[%s3705_s28 + $0x8] sm:$0xff] }
 0x4a3   :  { %2286 = vrot.lane.b32.xlu0 %v2213_v11, %s3041_s7 }
 0x4a7   :  { %2294 = vrot.lane.b32.xlu0 %v2214_v12, %s3042_s29  ;;  %v2959_v12 = vld [vmem:[%s3705_s28] sm:$0xff] }
 0x4ab   :  { %2302 = vrot.lane.b32.xlu0 %v2215_v13, %s3043_s0 }
 0x4ce   :  { %v1868_v46 = vpop.f32.mrb[36].mxu1  ;;  %v1914_v62 = vpop.f32.mrb[24].mxu0 }
 0x4cf   :  { %v2841_v33 = vpop.f32.mrb[37].mxu1  ;;  %v2847_v14 = vpop.f32.mrb[25].mxu0 }
 0x4d0   :  { %v1871_v15 = vpop.f32.mrb[38].mxu1  ;;  %v1917_v16 = vpop.f32.mrb[26].mxu0 }
 0x4d1   :  { %v2842_v17 = vpop.f32.mrb[39].mxu1  ;;  %v2848_v18 = vpop.f32.mrb[27].mxu0 }
 0x4d6   :  { %v1960_v56 = vpop.f32.mrb[40].mxu1 }
 0x4d7   :  { %v2080_v60 = vcombine.low %v1868_v46, %v1960_v56  ;;  %v2081_v19 = vcombine.high %v1868_v46, %v1960_v56  ;;  %v2853_v24 = vpop.f32.mrb[41].mxu1 }
 0x4d8   :  { %v1963_v25 = vpop.f32.mrb[42].mxu1 }
 0x4d9   :  { %v2854_v26 = vpop.f32.mrb[43].mxu1  ;;  %v2088_v31 = vrot.slane %v2080_v60, %v3231_v41  ;;  %v2095_v58 = vrot.slane %v2081_v19, %v3231_v41 }
 0x4f6   :  { %v2006_v27 = vpop.f32.mrb[28].mxu0 }
 0x4f7   :  { %v2096_v28 = vcombine.low %v1914_v62, %v2006_v27  ;;  %v2097_v29 = vcombine.high %v1914_v62, %v2006_v27  ;;  %v2859_v7 = vpop.f32.mrb[29].mxu0 }
 0x4f8   :  { %v2009_v30 = vpop.f32.mrb[30].mxu0  ;;  %v2909_v7 = vld [vmem:[%s3692_s10] sm:$0xff]  }
 0x4f9   :  { %v2104_v32 = vrot.slane %v2096_v28, %v3231_v41  ;;  %v2111_v34 = vrot.slane %v2097_v29, %v3231_v41  ;;  %v2860_v35 = vpop.f32.mrb[31].mxu0  ;;  %2862 = vmatpush3.bf16.msra.mxu1 %v2909_v7  ;;  %v2910_v30 = vld [vmem:[%s3692_s10 + $0x8] sm:$0xff]  }
 0x4fa   :  { %2863 = vmatprep.subr.bf16.mxu1 %v3034_v0  ;;  %v2915_v35 = vld [vmem:[%s3694_s12 + $0x20] sm:$0xff]  }
 0x4fb   :  { %v2112_v36 = vcombine.low %v2088_v31, %v2104_v32  ;;  %v2113_v37 = vcombine.high %v2088_v31, %v2104_v32  ;;  %v2128_v38 = vcombine.low %v2095_v58, %v2111_v34  ;;  %v2129_v40 = vcombine.high %v2095_v58, %v2111_v34  ;;  %v2911_v31 = vld [vmem:[%s3694_s12] sm:$0xff]   ;;  %v2912_v58 = vld [vmem:[%s3694_s12 + $0x8] sm:$0xff]   ;;  %v2913_v32 = vld [vmem:[%s3694_s12 + $0x10] sm:$0xff]  }
 0x4fc   :  { %2870 = vmatpush3.bf16.msra.mxu0 %v2911_v31  ;;  %v2914_v34 = vld [vmem:[%s3694_s12 + $0x18] sm:$0xff]  }
 0x4fd   :  { %v2120_v39 = vrot.slane %v2112_v36, %v3233_v48  ;;  %v2127_v42 = vrot.slane %v2113_v37, %v3233_v48  ;;  %v2136_v43 = vrot.slane %v2128_v38, %v3233_v48  ;;  %v2143_v44 = vrot.slane %v2129_v40, %v3233_v48  ;;  %2864 = vmatpush3.bf16.msra.mxu1 %v2910_v30  ;;  %v2916_v36 = vld [vmem:[%s3694_s12 + $0x28] sm:$0xff]  }
 0x4fe   :  { %2871 = vmatprep.subr.bf16.mxu0 %v3034_v0 }
 0x4ff   :  { %v2216_v45 = vcombine.low %v2120_v39, %v2127_v42  ;;  %v2669_v22 = vcombine.high %v2120_v39, %v2127_v42  ;;  %v2232_v54 = vcombine.low %v2136_v43, %v2143_v44  ;;  %v2670_v47 = vcombine.high %v2136_v43, %v2143_v44 }
 0x500   :  { %2872 = vmatpush3.bf16.msra.mxu0 %v2912_v58 }
 0x501   :  { %v2223_v53 = vrot.slane %v2216_v45, %v3231_v41  ;;  %v2231_v52 = vrot.slane %v2669_v22, %v3231_v41  ;;  %v2239_v49 = vrot.slane %v2232_v54, %v3231_v41  ;;  %v2247_v50 = vrot.slane %v2670_v47, %v3231_v41  ;;  %2873 = vmatprep.subr.bf16.mxu0 %v3034_v0  ;;  %v2671_v22 = vld [vmem:[%s3690_s8] ss:$0 sm:$0xff] }
 0x503   :  { %v2248_v61 = vcombine.low %v2223_v53, %v2231_v52  ;;  %v2264_v8 = vcombine.low %v2239_v49, %v2247_v50  ;;  %v2249_v20 = vcombine.high %v2223_v53, %v2231_v52  ;;  %v2265_v55 = vcombine.high %v2239_v49, %v2247_v50  ;;  %v2672_v52 = vld [vmem:[%s3691_s9] ss:$0 sm:$0xff] }
 0x504   :  { %2874 = vmatpush3.bf16.msra.mxu0 %v2913_v32 }
 0x505   :  { %v2256_v63 = vrot.slane %v2248_v61, %v3233_v48  ;;  %v2272_v59 = vrot.slane %v2264_v8, %v3233_v48  ;;  %v2263_v1 = vrot.slane %v2249_v20, %v3233_v48  ;;  %v2279_v2 = vrot.slane %v2265_v55, %v3233_v48  ;;  %2875 = vmatprep.subr.bf16.mxu0 %v3034_v0  ;;  %v2917_v20 = vld [vmem:[%s3694_s12 + $0x30] sm:$0xff]   ;;  %v2918_v55 = vld [vmem:[%s3694_s12 + $0x38] sm:$0xff]  }
 0x507   :  { %v2281_v3 = vcombine.high %v2256_v63, %v2272_v59  ;;  %v2282_v23 = vcombine.low %v2263_v1, %v2279_v2  ;;  %v2283_v4 = vcombine.high %v2263_v1, %v2279_v2  ;;  %v2280_v5 = vcombine.low %v2256_v63, %v2272_v59  ;;  %v2673_v63 = vld [vmem:[%s3693_s11] ss:$0 sm:$0xff]  ;;  %s3044_s11 = smov [#allocation6]  }
 0x508   :  { %2876 = vmatpush3.bf16.msra.mxu0 %v2914_v34  ;;  %s2611_s12 = sshll.u32 %s3044_s11, 4  ;;  %s2612_s12 = int_to_ptr.vmem [resolvable:$true] %s2611_s12 }
 0x509   :  { %2288 = vrot.lane.b32.xlu1 %v2281_v3, %s3041_s7  ;;  %2877 = vmatprep.subr.bf16.mxu0 %v3034_v0  ;;  %p2988_p9 = scmp.lt.s32.totalorder %s2612_s12, %s2612_s12 }
 0x50c   :  { %2878 = vmatpush3.bf16.msra.mxu0 %v2915_v35 }
 0x50d   :  { %2296 = vrot.lane.b32.xlu1 %v2282_v23, %s3042_s29  ;;  %2879 = vmatprep.subr.bf16.mxu0 %v3034_v0 }
 0x510   :  { %2880 = vmatpush3.bf16.msra.mxu0 %v2916_v36 }
 0x511   :  { %2304 = vrot.lane.b32.xlu1 %v2283_v4, %s3043_s0  ;;  %2881 = vmatprep.subr.bf16.mxu0 %v3034_v0 }
 0x514   :  { %2882 = vmatpush3.bf16.msra.mxu0 %v2917_v20 }
 0x515   :  { %v2287_v41 = vpop.permute.xlu0 %2286  ;;  %2883 = vmatprep.subr.bf16.mxu0 %v3034_v0 }
 0x516   :  { %v2308_v9 = vsel %vm1162_vm2, %v2212_v51, %v2287_v41 }
 0x518   :  { %2884 = vmatpush3.bf16.msra.mxu0 %v2918_v55 }
 0x519   :  { %v2295_v6 = vpop.permute.xlu0 %2294 }
 0x51a   :  { %v2311_v48 = vsel %vm2310_vm4, %v2308_v9, %v2295_v6  ;;  %v2677_v9 = vld [vmem:[%s3695_s13] ss:$0 sm:$0xff]  ;;  %s2983_s13 = scalar_lea.vmem %s2612_s12, 1024 }
 0x51b   :  { %p2984_p8 = scmp.ne.s32.totalorder %s2612_s12, %s2983_s13  ;;  %p2989_p10 = scmp.lt.s32.totalorder %s2983_s13, %s2983_s13 }
 0x51d   :  { %v2303_v10 = vpop.permute.xlu0 %2302  ;;  %p2990_p11 = por %p2989_p10, %p2988_p9 }
 0x51e   :  { %v2314_v11 = vsel %vm2313_vm5, %v2311_v48, %v2303_v10 }
 0x51f   :  { %v2316_v13 = vadd.f32 %v2959_v12, %v2314_v11  ;;  %p2991_p12 = pnand %p2990_p11, %p2984_p8 }
 0x521   :  { %v2318_v46 = vsel %vm96_vm1, %v2316_v13, 0.0 }
 0x522   :  { %2319 = vadd.xlane.f32.xlu0 %v2318_v46 }
 0x57b   :  { %v2289_v62 = vpop.permute.xlu1 %2288 }
 0x57c   :  { %v2309_v14 = vsel %vm1162_vm2, %v2280_v5, %v2289_v62 }
 0x57f   :  { %v2297_v33 = vpop.permute.xlu1 %2296 }
 0x580   :  { %v2312_v15 = vsel %vm2310_vm4, %v2309_v14, %v2297_v33 }
 0x583   :  { %v2305_v16 = vpop.permute.xlu1 %2304 }
 0x584   :  { %v2315_v21 = vsel %vm2313_vm5, %v2312_v15, %v2305_v16 }
 0x585   :  { %v2317_v51 = vadd.f32 %v2960_v57, %v2315_v21 }
 0x587   :  { %v2321_v17 = vsel %vm96_vm1, %v2317_v51, 0.0 }
 0x588   :  { %2322 = vadd.xlane.f32.xlu1 %v2321_v17 }
 0x5af   :  { %v2320_v18 = vpop.xlane.xlu0 %2319 }
 0x5b0   :  { %v2325_v56 = vmul.f32 0.03125, %v2320_v18 }
 0x5b2   :  { %v2327_v60 = vsub.f32 %v2316_v13, %v2325_v56 }
 0x5b4   :  { %v2329_v19 = vmul.f32 %v2327_v60, %v2327_v60 }
 0x5b6   :  { %v2331_v24 = vsel %vm96_vm1, %v2329_v19, 0.0 }
 0x5b7   :  { %2332 = vadd.xlane.f32.xlu0 %v2331_v24 }
 0x615   :  { %v2323_v25 = vpop.xlane.xlu1 %2322 }
 0x616   :  { %v2326_v26 = vmul.f32 0.03125, %v2323_v25 }
 0x618   :  { %v2328_v27 = vsub.f32 %v2317_v51, %v2326_v26 }
 0x61a   :  { %v2330_v28 = vmul.f32 %v2328_v27, %v2328_v27 }
 0x61c   :  { %v2334_v29 = vsel %vm96_vm1, %v2330_v28, 0.0 }
 0x61d   :  { %2335 = vadd.xlane.f32.xlu0 %v2334_v29 }
 0x644   :  { %v2333_v37 = vpop.xlane.xlu0 %2332 }
 0x645   :  { %v2337_v38 = vmul.f32 0.03125, %v2333_v37 }
 0x647   :  { %v2339_v40 = vadd.f32 1e-05, %v2337_v38 }
 0x649   :  { %2951 = vrsqrt.f32 %v2339_v40 }
 0x653   :  { %v2952_v44 = vpop.eup %2951 }
 0x654   :  { %v2343_v45 = vmul.f32 %v2952_v44, %v2327_v60 }
 0x656   :  { %v2352_v47 = vmul.f32 %v2671_v22, %v2343_v45 }
 0x658   :  { %v2361_v50 = vadd.f32 %v2672_v52, %v2352_v47 }
 0x6aa   :  { %v2336_v39 = vpop.xlane.xlu0 %2335 }
 0x6ab   :  { %v2338_v42 = vmul.f32 0.03125, %v2336_v39 }
 0x6ad   :  { %v2340_v43 = vadd.f32 1e-05, %v2338_v42 }
 0x6af   :  { %2953 = vrsqrt.f32 %v2340_v43 }
 0x6b9   :  { %v2954_v54 = vpop.eup %2953 }
 0x6ba   :  { %v2344_v53 = vmul.f32 %v2954_v54, %v2328_v27 }
 0x6bc   :  { %v2353_v49 = vmul.f32 %v2671_v22, %v2344_v53 }
 0x6be   :  { %v2362_v61 = vadd.f32 %v2672_v52, %v2353_v49 }
 0x6c0   :  { %v2363_v8 = vpack.c.bf16 %v2362_v61, %v2361_v50 }
 0x6c2   :  { %2866 = vmatmul.mubr.msk.bf16.vlgmr.msra.gmra.mrb[44].mxu1 %vm96_vm1, %v2363_v8 }
 0x795   :  { %v2424_v59 = vpop.f32.mrb[44].mxu1 }
 0x796   :  { %v2425_v1 = vadd.f32 %v2673_v63, %v2424_v59  ;;  %v2867_v2 = vpop.f32.mrb[45].mxu1 }
 0x797   :  { %v2427_v3 = vpop.f32.mrb[46].mxu1 }
 0x798   :  { %v2428_v23 = vadd.f32 %v2673_v63, %v2427_v3  ;;  %v2868_v4 = vpop.f32.mrb[47].mxu1  ;;  %v2431_v5 = vmax.f32 %v2425_v1, 0.0 }
 0x79a   :  { %v2432_v41 = vmax.f32 %v2428_v23, 0.0 }
 0x79c   :  { %v2433_v6 = vpack.c.bf16 %v2432_v41, %v2431_v5 }
 0x79e   :  { %2886 = vmatmul.mubr.bf16.vlgmr.msra.gmra.mrb[32].mxu0 %v2433_v6 }
 0x871   :  { %v2539_v0 = vpop.f32.mrb[32].mxu0 }
 0x872   :  { %v2540_v48 = vadd.f32 %v2677_v9, %v2539_v0  ;;  %v2887_v10 = vpop.f32.mrb[33].mxu0 }
 0x873   :  { %v2542_v11 = vpop.f32.mrb[34].mxu0 }
 0x874   :  { %v2543_v12 = vadd.f32 %v2677_v9, %v2542_v11  ;;  %v2888_v13 = vpop.f32.mrb[35].mxu0  ;;  %v2546_v46 = vadd.f32 %v2540_v48, %v2361_v50 }
 0x876   :  { %v2548_v62 = vsel %vm96_vm1, %v2546_v46, 0.0  ;;  %v2547_v33 = vadd.f32 %v2543_v12, %v2362_v61 }
 0x877   :  { %2549 = vadd.xlane.f32.xlu1 %v2548_v62 }
 0x878   :  { %v2551_v14 = vsel %vm96_vm1, %v2547_v33, 0.0 }
 0x879   :  { %2552 = vadd.xlane.f32.xlu0 %v2551_v14 }
 0x904   :  { %v2550_v15 = vpop.xlane.xlu1 %2549 }
 0x905   :  { %v2554_v16 = vmul.f32 0.03125, %v2550_v15 }
 0x906   :  { %v2553_v21 = vpop.xlane.xlu0 %2552 }
 0x907   :  { %v2556_v57 = vsub.f32 %v2546_v46, %v2554_v16  ;;  %v2555_v51 = vmul.f32 0.03125, %v2553_v21 }
 0x909   :  { %v2557_v17 = vsub.f32 %v2547_v33, %v2555_v51  ;;  %v2558_v18 = vmul.f32 %v2556_v57, %v2556_v57 }
 0x90b   :  { %v2560_v56 = vsel %vm96_vm1, %v2558_v18, 0.0  ;;  %v2559_v60 = vmul.f32 %v2557_v17, %v2557_v17 }
 0x90c   :  { %2561 = vadd.xlane.f32.xlu1 %v2560_v56 }
 0x90d   :  { %v2563_v19 = vsel %vm96_vm1, %v2559_v60, 0.0 }
 0x90e   :  { %2564 = vadd.xlane.f32.xlu0 %v2563_v19 }
 0x90f   :  { %2994 = shalt.err (!%p2991_p12)
}
 0x910   :  { %s2995_s6 = scalar_lea.hbm %s3699_s17, 1024 }
 0x911   :  { %p2996_p13 = scmp.ne.s32.totalorder %s3699_s17, %s2995_s6  ;;  %p2999_p0 = scmp.lt.u32.totalorder %s2995_s6, %s3699_s17 }
 0x913   :  { %p3001_p1 = pnand %p2999_p0, %p2996_p13 }
 0x915   :  { %3004 = shalt.err (!%p3001_p1)
}
 0x916   :  { %s3045_s27 = smov 128   ;;  %v2686_v30 = vld [vmem:[%s3696_s14] ss:$0 sm:$0xff] }
 0x917   :  { %2617 = dma.vmem_to_hbm [thread:$0]  %s2612_s12, 1024, %s3699_s17, [#allocation7], %s3045_s27, %s3045_s27, %s3041_s7  }
 0x918   :  { %v2687_v32 = vld [vmem:[%s3697_s15] ss:$0 sm:$0xff]  ;;  %s3046_s17 = smov [#allocation5]  }
 0x919   :  { %s2599_s2 = sshll.u32 %s3046_s17, 4  ;;  %s2600_s2 = int_to_ptr.vmem [resolvable:$true] %s2599_s2 }
 0x91a   :  { %s3005_s19 = scalar_lea.vmem %s2600_s2, 256  ;;  %p3010_p3 = scmp.lt.s32.totalorder %s2600_s2, %s2600_s2 }
 0x91b   :  { %p3006_p2 = scmp.ne.s32.totalorder %s2600_s2, %s3005_s19  ;;  %p3011_p4 = scmp.lt.s32.totalorder %s3005_s19, %s3005_s19 }
 0x91d   :  { %p3012_p5 = por %p3011_p4, %p3010_p3 }
 0x91f   :  { %p3013_p6 = pnand %p3012_p5, %p3006_p2 }
 0x999   :  { %v2562_v24 = vpop.xlane.xlu1 %2561 }
 0x99a   :  { %v2566_v25 = vmul.f32 0.03125, %v2562_v24 }
 0x99b   :  { %v2565_v26 = vpop.xlane.xlu0 %2564 }
 0x99c   :  { %v2568_v27 = vadd.f32 1e-06, %v2566_v25  ;;  %v2567_v28 = vmul.f32 0.03125, %v2565_v26 }
 0x99e   :  { %2955 = vrsqrt.f32 %v2568_v27  ;;  %v2569_v29 = vadd.f32 1e-06, %v2567_v28 }
 0x9a0   :  { %2957 = vrsqrt.f32 %v2569_v29 }
 0x9a8   :  { %v2956_v7 = vpop.eup %2955 }
 0x9a9   :  { %v2572_v31 = vmul.f32 %v2956_v7, %v2556_v57 }
 0x9aa   :  { %v2958_v58 = vpop.eup %2957 }
 0x9ab   :  { %v2581_v34 = vmul.f32 %v2686_v30, %v2572_v31  ;;  %v2573_v35 = vmul.f32 %v2958_v58, %v2557_v17 }
 0x9ad   :  { %v2582_v36 = vmul.f32 %v2686_v30, %v2573_v35  ;;  %v2590_v37 = vadd.f32 %v2687_v32, %v2581_v34 }
 0x9af   :  { %v2591_v38 = vadd.f32 %v2687_v32, %v2582_v36  ;;  %2592 = vst.msk [vmem:[#allocation5] sm:$0xff] %vm96_vm1, %v2590_v37 }
 0x9b1   :  { %2593 = vst.msk [vmem:[#allocation5 + $0x8] sm:$0xff] %vm96_vm1, %v2591_v38 }
 0x9b2   :  { %3016 = shalt.err (!%p3013_p6)
}
 0x9b3   :  { %s3017_s1 = scalar_lea.hbm %s3698_s16, 256 }
 0x9b4   :  { %p3018_p7 = scmp.ne.s32.totalorder %s3698_s16, %s3017_s1  ;;  %p3021_p8 = scmp.lt.u32.totalorder %s3017_s1, %s3698_s16 }
 0x9b6   :  { %p3023_p9 = pnand %p3021_p8, %p3018_p7 }
 0x9b8   :  { %3026 = shalt.err (!%p3023_p9)
}
 0x9b9   :  { %2605 = dma.vmem_to_hbm [thread:$0]  %s2600_s2, 256, %s3698_s16, [#allocation4], %s3045_s27, %s3045_s27, %s3041_s7  }
 0x9ba   :  { %3029 = dma.done.wait [#allocation4], 256  }
 0x9bb   :  { %3030 = vsyncadd [#allocation4], 4294967040 }
 0x9bc   :  { %3031 = dma.done.wait [#allocation7], 1024  }
 0x9bd   :  { %3032 = vsyncadd [#allocation7], 4294966272 }
 0x9be   :  { %2624 = vsyncpa [#allocation3], 1 }
 0x9bf   :  { %2625 = vsyncpa [#allocation4], 1 }
 0x9c0   :  { %2626 = vsyncpa [#allocation7], 1 }

</bundles_post_ra>
